<compile_context>
chip_gen: v5e
topology: v5e:2x2
jax: 0.10.0
libtpu: 0.0.40
codegen_flags: <defaults>
</compile_context>

<pallas_src>
import jax
import jax.numpy as jnp
from jax.experimental import pallas as pl
from jax.experimental.pallas import tpu as pltpu

_MIB = 1024 * 1024


def _round_up(x, m):
    return ((x + m - 1) // m) * m


def _tpu_generation():
    try:
        kind = jax.devices()[0].device_kind.lower()
    except Exception:
        return "unknown"
    if "v5 lite" in kind or "v5e" in kind or "v5lite" in kind:
        return "v5e"
    if "v6" in kind:
        return "v6e"
    if "v7" in kind:
        return "v7x"
    return "unknown"


# tm/tn/tk defaults, VMEM ceiling, #TC heuristic, weight-resident B-size limit.
_GEN_CFG = {
    "v5e": dict(tm=1024, tn=512,  tk=512, vmem_cap=100 * _MIB, two_tc=False,
                wres_bytes=32 * _MIB),
    "v6e": dict(tm=2048, tn=1024, tk=512, vmem_cap=100 * _MIB, two_tc=False,
                wres_bytes=32 * _MIB),
    "v7x": dict(tm=1024, tn=1024, tk=512, vmem_cap=50 * _MIB,  two_tc=True,
                wres_bytes=16 * _MIB),
    # Unknown chip: conservative budgets that also fit v7x's 64 MiB VMEM.
    "unknown": dict(tm=1024, tn=1024, tk=512, vmem_cap=48 * _MIB, two_tc=True,
                    wres_bytes=16 * _MIB),
}


# ----------------------------- kernels ---------------------------------------

def matmul_kernel_kloop(x_ref, b_ref, o_ref, acc_ref):
    """Tiled matmul with a K-reduction grid axis (last) and f32 accumulator."""
    @pl.when(pl.program_id(2) == 0)
    def _():
        acc_ref[...] = jnp.zeros_like(acc_ref)

    acc_ref[...] += jnp.dot(
        x_ref[...], b_ref[...], preferred_element_type=jnp.float32
    )

    @pl.when(pl.program_id(2) == pl.num_programs(2) - 1)
    def _():
        o_ref[...] = acc_ref[...].astype(o_ref.dtype)


def matmul_kernel_single_k(x_ref, b_ref, o_ref):
    """Whole K in one block -> no accumulator scratch, no reduction axis."""
    o_ref[...] = jnp.dot(
        x_ref[...], b_ref[...], preferred_element_type=jnp.float32
    ).astype(o_ref.dtype)


# ----------------------------- dispatcher -------------------------------------

def _vmem_limit(footprint, cfg):
    return int(min(cfg["vmem_cap"], max(int(1.2 * footprint), 16 * _MIB)))


def _matmul_padded(x, b, *, tm, tn, tk, cfg, weight_resident=None):
    """x: (M_pad, K_pad), b: (K_pad, N_pad); all dims tile-aligned."""
    M_pad, K_pad = x.shape
    K_pad2, N_pad = b.shape
    assert K_pad == K_pad2
    assert M_pad % tm == 0 and N_pad % tn == 0 and K_pad % tk == 0

    grid_m = M_pad // tm
    grid_n = N_pad // tn
    grid_k = K_pad // tk
    in_b = x.dtype.itemsize
    w_b = b.dtype.itemsize
    out_b = in_b
    flops = 2 * M_pad * N_pad * K_pad

    # ---- Weight-resident fast path: B is loaded into VMEM exactly once ------
    if weight_resident is None:
        wr_footprint = (2 * tm * K_pad * in_b        # x double-buffer
                        + 2 * K_pad * N_pad * w_b    # B (counted x2, conservative)
                        + 2 * tm * N_pad * out_b)    # out double-buffer
        weight_resident = (K_pad * N_pad * w_b <= cfg["wres_bytes"]
                           and wr_footprint <= int(0.8 * cfg["vmem_cap"]))

    if weight_resident:
        footprint = (2 * tm * K_pad * in_b + 2 * K_pad * N_pad * w_b
                     + 2 * tm * N_pad * out_b)
        cost = pl.CostEstimate(
            flops=flops, transcendentals=0,
            bytes_accessed=in_b * M_pad * K_pad + w_b * K_pad * N_pad
            + out_b * M_pad * N_pad)
        return pl.pallas_call(
            matmul_kernel_single_k,
            out_shape=jax.ShapeDtypeStruct((M_pad, N_pad), x.dtype),
            grid_spec=pltpu.PrefetchScalarGridSpec(
                num_scalar_prefetch=0,
                grid=(grid_m,),
                in_specs=[
                    pl.BlockSpec((tm, K_pad), lambda i: (i, 0)),
                    # Constant block index -> Pallas skips re-DMA of B.
                    pl.BlockSpec((K_pad, N_pad), lambda i: (0, 0)),
                ],
                out_specs=pl.BlockSpec((tm, N_pad), lambda i: (i, 0)),
            ),
            compiler_params=pltpu.CompilerParams(
                dimension_semantics=("parallel",),
                vmem_limit_bytes=_vmem_limit(footprint, cfg),
            ),
            cost_estimate=cost,
        )(x, b)

    # ---- Streaming paths: x re-read grid_n times, B re-read grid_m times ----
    cost = pl.CostEstimate(
        flops=flops, transcendentals=0,
        bytes_accessed=in_b * M_pad * K_pad * grid_n
        + w_b * K_pad * N_pad * grid_m + out_b * M_pad * N_pad)

    if grid_k == 1:
        footprint = (2 * tm * K_pad * in_b + 2 * K_pad * tn * w_b
                     + 2 * tm * tn * out_b)
        return pl.pallas_call(
            matmul_kernel_single_k,
            out_shape=jax.ShapeDtypeStruct((M_pad, N_pad), x.dtype),
            grid_spec=pltpu.PrefetchScalarGridSpec(
                num_scalar_prefetch=0,
                grid=(grid_m, grid_n),
                in_specs=[
                    pl.BlockSpec((tm, K_pad), lambda i, j: (i, 0)),
                    pl.BlockSpec((K_pad, tn), lambda i, j: (0, j)),
                ],
                out_specs=pl.BlockSpec((tm, tn), lambda i, j: (i, j)),
            ),
            compiler_params=pltpu.CompilerParams(
                dimension_semantics=("parallel", "parallel"),
                vmem_limit_bytes=_vmem_limit(footprint, cfg),
            ),
            cost_estimate=cost,
        )(x, b)

    footprint = (2 * tm * tk * in_b + 2 * tk * tn * w_b
                 + tm * tn * 4 + 2 * tm * tn * out_b)
    return pl.pallas_call(
        matmul_kernel_kloop,
        out_shape=jax.ShapeDtypeStruct((M_pad, N_pad), x.dtype),
        grid_spec=pltpu.PrefetchScalarGridSpec(
            num_scalar_prefetch=0,
            grid=(grid_m, grid_n, grid_k),
            in_specs=[
                pl.BlockSpec((tm, tk), lambda i, j, k: (i, k)),
                pl.BlockSpec((tk, tn), lambda i, j, k: (k, j)),
            ],
            out_specs=pl.BlockSpec((tm, tn), lambda i, j, k: (i, j)),
            scratch_shapes=[pltpu.VMEM((tm, tn), jnp.float32)],
        ),
        compiler_params=pltpu.CompilerParams(
            dimension_semantics=("parallel", "parallel", "arbitrary"),
            vmem_limit_bytes=_vmem_limit(footprint, cfg),
        ),
        cost_estimate=cost,
    )(x, b)


def _choose_tm(M, grid_n, cfg):
    tm = min(cfg["tm"], _round_up(M, 128))
    if cfg["two_tc"]:
        # Keep >= 2 parallel output blocks for the 2 TensorCores by splitting M
        # (never N: tn=128 would feed only half the 256-wide MXU and narrow the
        # lane-dense output store).
        M_pad = _round_up(M, tm)
        if (M_pad // tm) * grid_n < 2 and tm >= 256:
            tm //= 2
    return tm


# ----------------------------- public API -------------------------------------

def matmul(x, b, *, weight_resident=None):
    """out = x @ b,  x: (M, K), b: (K, N) -> (M, N). Functional entry point."""
    M, K = x.shape
    K2, N = b.shape
    assert K == K2, "inner dimensions must match"
    cfg = _GEN_CFG[_tpu_generation()]

    tn = min(cfg["tn"], _round_up(N, 128))
    tk = min(cfg["tk"], _round_up(K, 128))
    N_pad = _round_up(N, tn)
    K_pad = _round_up(K, tk)
    tm = _choose_tm(M, N_pad // tn, cfg)
    M_pad = _round_up(M, tm)

    # Zero padding is matmul-safe; padded rows/cols sliced off below.
    if (M_pad, K_pad) != (M, K):
        x = jnp.pad(x, ((0, M_pad - M), (0, K_pad - K)))
    if (K_pad, N_pad) != (K, N):
        b = jnp.pad(b, ((0, K_pad - K), (0, N_pad - N)))

    out = _matmul_padded(x, b, tm=tm, tn=tn, tk=tk, cfg=cfg,
                         weight_resident=weight_resident)
    if (M_pad, N_pad) != (M, N):
        out = out[:M, :N]
    return out


class Matmul:
    """Pallas analogue of the PyTorch Matmul module: holds B (K, N) and
    computes forward(x) = x @ B. The weight is padded to tile-aligned shape
    once at construction so no per-call HBM copy of the weight is needed."""

    def __init__(self, M, N, K, *, key=None, dtype=jnp.bfloat16):
        self.M, self.N, self.K = M, N, K
        self._cfg = _GEN_CFG[_tpu_generation()]
        self._tn = min(self._cfg["tn"], _round_up(N, 128))
        self._tk = min(self._cfg["tk"], _round_up(K, 128))
        self._N_pad = _round_up(N, self._tn)
        self._K_pad = _round_up(K, self._tk)
        if key is None:
            key = jax.random.PRNGKey(0)
        B = jax.random.normal(key, (K, N), dtype=jnp.float32).astype(dtype)
        if (self._K_pad, self._N_pad) != (K, N):
            B = jnp.pad(B, ((0, self._K_pad - K), (0, self._N_pad - N)))
        self.B = B  # pre-padded, tile-aligned

    def __call__(self, x):
        M, K = x.shape
        assert K == self.K, "inner dimensions must match"
        tm = _choose_tm(M, self._N_pad // self._tn, self._cfg)
        M_pad = _round_up(M, tm)
        if (M_pad, self._K_pad) != (M, K):
            x = jnp.pad(x, ((0, M_pad - M), (0, self._K_pad - K)))
        out = _matmul_padded(x, self.B, tm=tm, tn=self._tn, tk=self._tk,
                             cfg=self._cfg)
        if (M_pad, self._N_pad) != (M, self.N):
            out = out[:M, :self.N]
        return out


# ----------------------------- demo / check -----------------------------------

def _assert_close(out, x, b_unpadded):
    ref = jnp.dot(x.astype(jnp.float32), b_unpadded.astype(jnp.float32))
    err = float(jnp.max(jnp.abs(out.astype(jnp.float32) - ref)))
    tol = 2e-2 * float(jnp.max(jnp.abs(ref))) + 1e-3
    assert err < tol, f"max abs error too large: {err} (tol {tol})"


if __name__ == "__main__":
    key = jax.random.PRNGKey(0)
    k1, k2, k3, k4, k5, k6 = jax.random.split(key, 6)

    # Case 1: module-style usage -> weight-resident fast path (B loaded once).
    M, N, K = 256, 384, 512
    mod = Matmul(M, N, K, key=k1)
    x1 = jax.random.normal(k2, (M, K), dtype=jnp.float32).astype(jnp.bfloat16)
    out1 = jax.block_until_ready(mod(x1))
    assert out1.shape == (M, N) and out1.dtype == x1.dtype
    _assert_close(out1, x1, mod.B[:K, :N])

    # Case 2: functional, K > tk with non-aligned M/K -> K-loop accumulator path.
    M, N, K = 192, 256, 1280
    x2 = jax.random.normal(k3, (M, K), dtype=jnp.float32).astype(jnp.bfloat16)
    b2 = jax.random.normal(k4, (K, N), dtype=jnp.float32).astype(jnp.bfloat16)
    out2 = jax.block_until_ready(matmul(x2, b2, weight_resident=False))
    assert out2.shape == (M, N) and out2.dtype == x2.dtype
    _assert_close(out2, x2, b2)

    # Case 3: functional, single-K streaming path (weight-resident disabled).
    M, N, K = 256, 384, 256
    x3 = jax.random.normal(k5, (M, K), dtype=jnp.float32).astype(jnp.bfloat16)
    b3 = jax.random.normal(k6, (K, N), dtype=jnp.float32).astype(jnp.bfloat16)
    out3 = jax.block_until_ready(matmul(x3, b3, weight_resident=False))
    assert out3.shape == (M, N) and out3.dtype == x3.dtype
    _assert_close(out3, x3, b3)

    print("KERNEL_OK")
</pallas_src>

<mosaic_0001>
module attributes {stable_mosaic.version = 11 : i64} {
  func.func @matmul_kernel_single_k(%arg0: i32, %arg1: memref<128x512xbf16, #tpu.memory_space<vmem>>, %arg2: memref<512x384xbf16, #tpu.memory_space<vmem>>, %arg3: memref<128x384xbf16, #tpu.memory_space<vmem>>) attributes {dimension_semantics = [#tpu.dimension_semantics<parallel>], iteration_bounds = array<i64: 2>, scalar_prefetch = 0 : i64, scratch_operands = 0 : i64, tpu.core_type = #tpu.core_type<tc>, window_params = [{transform_indices = @transform_0, window_bounds = array<i64: 128, 512>}, {pipeline_mode = #tpu.pipeline_mode<synchronous>, transform_indices = @transform_1, window_bounds = array<i64: 512, 384>}, {transform_indices = @transform_2, window_bounds = array<i64: 128, 384>}]} {
    %c0 = arith.constant 0 : index
    %c0_0 = arith.constant 0 : index
    %0 = vector.load %arg1[%c0, %c0_0] : memref<128x512xbf16, #tpu.memory_space<vmem>>, vector<128x512xbf16>
    %c0_1 = arith.constant 0 : index
    %c0_2 = arith.constant 0 : index
    %1 = vector.load %arg2[%c0_1, %c0_2] : memref<512x384xbf16, #tpu.memory_space<vmem>>, vector<512x384xbf16>
    %cst = arith.constant dense<0.000000e+00> : vector<128x384xf32>
    %2 = tpu.matmul %0, %1, %cst {dimension_numbers = #tpu.dot_dimension_numbers<[1], [0], [0], [1], [0, 0, 1, 1], [], []>} : vector<128x512xbf16>, vector<512x384xbf16>, vector<128x384xf32> -> vector<128x384xf32>
    %3 = arith.truncf %2 : vector<128x384xf32> to vector<128x384xbf16>
    %c0_3 = arith.constant 0 : index
    %c0_4 = arith.constant 0 : index
    %4 = vector.load %arg3[%c0_3, %c0_4] : memref<128x384xbf16, #tpu.memory_space<vmem>>, vector<128x384xbf16>
    tpu.vector_store %arg3[%c0_3, %c0_4], %3 {strides = array<i32>} : memref<128x384xbf16, #tpu.memory_space<vmem>>, vector<128x384xbf16>,
    return
  }
  func.func @transform_0(%arg0: i32) -> (i32, i32) {
    %c0_i32 = arith.constant 0 : i32
    %c0_i32_0 = arith.constant 0 : i32
    return %arg0, %c0_i32 : i32, i32
  }
  func.func @transform_1(%arg0: i32) -> (i32, i32) {
    %c0_i32 = arith.constant 0 : i32
    %c0_i32_0 = arith.constant 0 : i32
    %c0_i32_1 = arith.constant 0 : i32
    return %c0_i32, %c0_i32_0 : i32, i32
  }
  func.func @transform_2(%arg0: i32) -> (i32, i32) {
    %c0_i32 = arith.constant 0 : i32
    %c0_i32_0 = arith.constant 0 : i32
    return %arg0, %c0_i32 : i32, i32
  }
}

</mosaic_0001>

<bundles_post_ra>
// kernel: tpu_custom_call.1
= control target key start
LH: loop header
LB: loop body
LE: loop exit
PB: predicated region body
PF: predicated region fallthrough
CT: control target
= control target key end

     0   :  { %7 = vsyncpa [#allocation3], 0  ;;  %s3095_s0 = inlined_call_operand.hbm [shape: bf16[256,512], index: 0, kind: input, shape index: {}]   ;;  %s3096_s1 = inlined_call_operand.hbm [shape: bf16[512,384], index: 1, kind: input, shape index: {}]   ;;  %s3097_s2 = inlined_call_operand.hbm [shape: bf16[256,384], index: 2, kind: output, shape index: {}]  }
   0x1   :  { %9 = vsyncpa [#allocation3 + $0x1], 0 }
   0x2   :  { %10 = vsyncpa [#allocation6], 0 }
   0x3   :  { %11 = vsyncpa [#allocation4], 0 }
   0x4   :  { %13 = vsyncpa [#allocation4 + $0x1], 0  ;;  %s2645_s9 = smov 0   ;;  %s2647_s10 = smov 0  }
   0x5   :  { %s2649_s11 = smov 0   ;;  %s2651_s12 = smov 0  }
   0x6 LB: > { %s2666_s13 = sadd.s32 4294967295, %s2621_s12   ;;  %s1768_s14 = sadd.s32 4294967294, %s2621_s12   ;;  %s2621_s12 = sphi %s2651_s12, %s3107_s12   ;;  %s2617_s11 = sphi %s2649_s11, %s3106_s11   ;;  %s2613_s10 = sphi %s2647_s10, %s3105_s10   ;;  %s2609_s9 = sphi %s2645_s9, %s3104_s9  }
   0x7   : > { %p39_p0 = scmp.ne.s32.totalorder %s2613_s10, %s2609_s9  ;;  %p40_p1 = scmp.eq.s32.totalorder %s2666_s13, 0 }
   0x8   : > { %p84_p2 = scmp.eq.s32.totalorder %s2666_s13, 1  ;;  %p90_p3 = scmp.eq.s32.totalorder %s1768_s14, 1 }
   0x9   : > { %p2675_p4 = por %p40_p1, %p39_p0  ;;  %p1769_p5 = scmp.ge.s32.totalorder %s2621_s12, 1 }
   0xa   : > { %p2680_p6 = por %p90_p3, %p39_p0  ;;  %p97_p7 = scmp.lt.s32.totalorder %s2621_s12, 3 }
   0xb   : > { %s108_s19 = sshll.u32 %s3096_s1, 4  ;;  %s2623_s21 = smov [#allocation5]   ;;  %s109_s19 = int_to_ptr.hbm [resolvable:$true] %s108_s19 }
   0xc   : > { %p2688_p8 = pnand %p1769_p5, %p97_p7  ;;  %s110_s22 = sshll.u32 %s2623_s21, 4  ;;  %s111_s22 = int_to_ptr.vmem [resolvable:$true] %s110_s22 }
   0xd   : > { %s2698_s23 = sadd.s32 1, %s2621_s12   ;;  %s2624_s24 = smov 192  }
   0xe   : > { %p2436_p9 = pneg %p2688_p8  ;;  %s2625_s25 = smov 12  }
   0xf   : > { %s23_s26 = ssub.s32 %s2621_s12, %s2698_s23  ;;  %s26_s27 = sadd.s32 1, %s2617_s11 }
  0x10   : > { %p2437_p10 = pnand %p2436_p9, %p40_p1  ;;  %p24_p12 = scmp.eq.s32.totalorder %s23_s26, 0 }
  0x11   : > { %p33_p13 = scmp.ne.s32.totalorder %s2617_s11, %s2613_s10  ;;  %p34_p0 = scmp.eq.s32.totalorder %s2621_s12, 0 }
  0x12   : > { %2439 = dma.hbm_to_vmem [thread:$0]  (!%p2437_p10), %s109_s19, 12288, %s111_s22, [#allocation6], %s2624_s24, %s2624_s24, %s2625_s25  }
  0x13   : > { %p2449_p3 = scmp.lt.s32.totalorder %s2621_s12, 2  ;;  %p35_p5 = por %p34_p0, %p33_p13 }
  0x14   : > { %s2708_s28 = scalar_select %p24_p12, %s2617_s11, %s26_s27  }
  0x15   : > { %p2712_p7 = por %p84_p2, %p33_p13  ;;  %s124_s30 = sand.u32 1, %s2617_s11  }
  0x16   : > { %s2297_s3 = sshll.u32 %s2621_s12, 8  ;;  %s1772_s4 = sshll.u32 %s124_s30, 8 }
  0x17   : > { %s134_s7 = scalar_lea.hbm %s3095_s0, %s2297_s3  ;;  %s128_s14 = scalar_lea.vmem [#allocation2], %s1772_s4 }
  0x18   : > { %s135_s8 = sshll.u32 %s134_s7, 4  ;;  %s137_s17 = sshll.u32 %s128_s14, 4  ;;  %s136_s8 = int_to_ptr.hbm [resolvable:$true] %s135_s8  ;;  %s138_s17 = int_to_ptr.vmem [resolvable:$true] %s137_s17 }
  0x19   : > { %p2723_p9 = pnand %p2449_p3, %p35_p5  ;;  %s125_s19 = scalar_lea.sflag [#allocation3], %s124_s30 }
  0x1a   : > { %s2521_s21 = sshra.s32 %s136_s8, 4  ;;  %s2528_s26 = scalar_lea.hbm %s3095_s0, 512  ;;  %s2522_s21 = int_to_ptr.hbm [resolvable:$true] %s2521_s21 }
  0x1b   : > { %s2523_s22 = scalar_lea.hbm %s2522_s21, 256  ;;  %p2525_p10 = pneg %p2723_p9 }
  0x1c   : > { %p2524_p2 = scmp.ne.s32.totalorder %s2522_s21, %s2523_s22  ;;  %p2529_p0 = scmp.lt.s32.totalorder %s2522_s21, %s3095_s0 }
  0x1d   : > { %p2530_p3 = scmp.lt.s32.totalorder %s2528_s26, %s2523_s22 }
  0x1e   : > { %p2526_p12 = pnand %p2525_p10, %p2524_p2 }
  0x1f   : > { %p2531_p5 = por %p2530_p3, %p2529_p0 }
  0x20   : > { %p2527_p13 = pneg %p2526_p12 }
  0x22   : > { %p2532_p11 = pnand %p2531_p5, %p2527_p13 }
  0x24   : > { %2535 = shalt.err (!%p2532_p11)
}
  0x25   : > { %s2626_s30 = smov 256   ;;  %s2627_s4 = smov 16  }
  0x26   : > { %2443 = dma.hbm_to_vmem [thread:$0]  (!%p2723_p9), %s136_s8, 4096, %s138_s17, %s125_s19, %s2626_s30, %s2626_s30, %s2627_s4  }
  0x27   : > { %149 = sbr.rel (%p2688_p8) target bundleno = 601 (0x259), region = 28  ;;  %s2740_s5 = sand.u32 (!%p2688_p8), 1, %s2613_s10  }
  0x28   : > { %s1777_s6 = sshll.u32 (!%p2688_p8), %s2740_s5, 8  ;;  %s152_s7 = scalar_lea.sflag (!%p2688_p8), [#allocation3], %s2740_s5 }
  0x29   : > { %s2744_s14 = scalar_lea.vmem (!%p2688_p8), [#allocation2], %s1777_s6 }
  0x2c   : > { %2596 = dma.done.wait (%p2675_p4), %s152_s7, 4096  }
  0x2d   : > { %2598 = vsyncadd (%p2675_p4), %s152_s7, 4294963200 }
  0x2e   : > { %2600 = dma.done.wait (%p40_p1), [#allocation6], 12288  }
  0x2f   : > { %2602 = vsyncadd (%p40_p1), [#allocation6], 4294955008  ;;  %v1993_v0 = vld [vmem:[#allocation5 + $0xa8] sm:$0xf]  ;;  %v2352_v1 = vld [vmem:[#allocation5 + $0xb0] sm:$0xf0] }
  0x30   : > { %v2089_v2 = vld [vmem:[#allocation5 + $0x168] sm:$0xf]  ;;  %v1994_v3 = vor.u32 %v2352_v1, %v1993_v0  ;;  %v2376_v4 = vld [vmem:[#allocation5 + $0x170] sm:$0xf0]  ;;  %v1981_v11 = vld [vmem:[#allocation5 + $0x90] sm:$0xf] }
  0x31   : > { %v2185_v5 = vld [vmem:[#allocation5 + $0x228] sm:$0xf]  ;;  %v2400_v6 = vld [vmem:[#allocation5 + $0x230] sm:$0xf0]  ;;  %v2090_v7 = vor.u32 %v2376_v4, %v2089_v2  ;;  %v2349_v13 = vld [vmem:[#allocation5 + $0x98] sm:$0xf0] }
  0x32   : > { %v2186_v8 = vor.u32 %v2400_v6, %v2185_v5  ;;  %v2281_v9 = vld [vmem:[#allocation5 + $0x2e8] sm:$0xf]  ;;  %v2424_v10 = vld [vmem:[#allocation5 + $0x2f0] sm:$0xf0]  ;;  %1016 = vmatpush.bf16.msra.mxu0 %v1994_v3  ;;  %v2077_v14 = vld [vmem:[#allocation5 + $0x150] sm:$0xf]  ;;  %v1982_v16 = vor.u32 %v2349_v13, %v1981_v11 }
  0x33   : > { %v2282_v12 = vor.u32 %v2424_v10, %v2281_v9  ;;  %v2373_v15 = vld [vmem:[#allocation5 + $0x158] sm:$0xf0]  ;;  %1065 = vmatpush.bf16.msra.mxu1 %v2090_v7  ;;  %v2173_v18 = vld [vmem:[#allocation5 + $0x210] sm:$0xf]  ;;  %v1969_v23 = vld [vmem:[#allocation5 + $0x78] sm:$0xf] }
  0x34   : > { %1114 = vmatpush.bf16.msra.mxu2 %v2186_v8  ;;  %v2078_v17 = vor.u32 %v2373_v15, %v2077_v14  ;;  %v2397_v19 = vld [vmem:[#allocation5 + $0x218] sm:$0xf0]  ;;  %v2269_v20 = vld [vmem:[#allocation5 + $0x2d0] sm:$0xf]  ;;  %v2346_v24 = vld [vmem:[#allocation5 + $0x80] sm:$0xf0] }
  0x35   : > { %1163 = vmatpush.bf16.msra.mxu3 %v2282_v12  ;;  %v2174_v21 = vor.u32 %v2397_v19, %v2173_v18  ;;  %v2421_v22 = vld [vmem:[#allocation5 + $0x2d8] sm:$0xf0]  ;;  %v2065_v26 = vld [vmem:[#allocation5 + $0x138] sm:$0xf]  ;;  %v2370_v27 = vld [vmem:[#allocation5 + $0x140] sm:$0xf0]  ;;  %v1970_v29 = vor.u32 %v2346_v24, %v1969_v23 }
  0x36   : > { %v2270_v25 = vor.u32 %v2421_v22, %v2269_v20  ;;  %v2161_v28 = vld [vmem:[#allocation5 + $0x1f8] sm:$0xf]  ;;  %1017 = vmatpush.bf16.msra.mxu0 %v1982_v16  ;;  %v2394_v30 = vld [vmem:[#allocation5 + $0x200] sm:$0xf0]  ;;  %v2066_v33 = vor.u32 %v2370_v27, %v2065_v26  ;;  %v1957_v35 = vld [vmem:[#allocation5 + $0x60] sm:$0xf] }
  0x37   : > { %v2257_v31 = vld [vmem:[#allocation5 + $0x2b8] sm:$0xf]  ;;  %v2418_v32 = vld [vmem:[#allocation5 + $0x2c0] sm:$0xf0]  ;;  %1066 = vmatpush.bf16.msra.mxu1 %v2078_v17  ;;  %v2162_v34 = vor.u32 %v2394_v30, %v2161_v28  ;;  %v2343_v36 = vld [vmem:[#allocation5 + $0x68] sm:$0xf0] }
  0x38   : > { %1115 = vmatpush.bf16.msra.mxu2 %v2174_v21  ;;  %v2053_v37 = vld [vmem:[#allocation5 + $0x120] sm:$0xf]  ;;  %v2258_v38 = vor.u32 %v2418_v32, %v2257_v31  ;;  %v2367_v39 = vld [vmem:[#allocation5 + $0x128] sm:$0xf0]  ;;  %v1958_v44 = vor.u32 %v2343_v36, %v1957_v35  ;;  %v1945_v47 = vld [vmem:[#allocation5 + $0x48] sm:$0xf] }
  0x39   : > { %1164 = vmatpush.bf16.msra.mxu3 %v2270_v25  ;;  %v2149_v40 = vld [vmem:[#allocation5 + $0x1e0] sm:$0xf]  ;;  %v2391_v41 = vld [vmem:[#allocation5 + $0x1e8] sm:$0xf0]  ;;  %v2054_v45 = vor.u32 %v2367_v39, %v2053_v37  ;;  %v2340_v48 = vld [vmem:[#allocation5 + $0x50] sm:$0xf0] }
  0x3a   : > { %v2245_v42 = vld [vmem:[#allocation5 + $0x2a0] sm:$0xf]  ;;  %v2415_v43 = vld [vmem:[#allocation5 + $0x2a8] sm:$0xf0]  ;;  %1018 = vmatpush.bf16.msra.mxu0 %v1970_v29  ;;  %v2150_v46 = vor.u32 %v2391_v41, %v2149_v40  ;;  %v2041_v49 = vld [vmem:[#allocation5 + $0x108] sm:$0xf]  ;;  %v1946_v56 = vor.u32 %v2340_v48, %v1945_v47 }
  0x3b   : > { %1067 = vmatpush.bf16.msra.mxu1 %v2066_v33  ;;  %v2246_v50 = vor.u32 %v2415_v43, %v2245_v42  ;;  %v2364_v51 = vld [vmem:[#allocation5 + $0x110] sm:$0xf0]  ;;  %v2137_v52 = vld [vmem:[#allocation5 + $0x1c8] sm:$0xf]  ;;  %v1933_v59 = vld [vmem:[#allocation5 + $0x30] sm:$0xf] }
  0x3c   : > { %1116 = vmatpush.bf16.msra.mxu2 %v2162_v34  ;;  %v2388_v53 = vld [vmem:[#allocation5 + $0x1d0] sm:$0xf0]  ;;  %v2233_v54 = vld [vmem:[#allocation5 + $0x288] sm:$0xf]  ;;  %v2042_v57 = vor.u32 %v2364_v51, %v2041_v49  ;;  %v2337_v60 = vld [vmem:[#allocation5 + $0x38] sm:$0xf0] }
  0x3d   : > { %1165 = vmatpush.bf16.msra.mxu3 %v2258_v38  ;;  %v2412_v55 = vld [vmem:[#allocation5 + $0x290] sm:$0xf0]  ;;  %v2138_v58 = vor.u32 %v2388_v53, %v2137_v52  ;;  %v2029_v61 = vld [vmem:[#allocation5 + $0xf0] sm:$0xf]  ;;  %v2361_v63 = vld [vmem:[#allocation5 + $0xf8] sm:$0xf0]  ;;  %v1934_v4 = vor.u32 %v2337_v60, %v1933_v59 }
  0x3e   : > { %1019 = vmatpush.bf16.msra.mxu0 %v1958_v44  ;;  %v2234_v62 = vor.u32 %v2412_v55, %v2233_v54  ;;  %v2125_v0 = vld [vmem:[#allocation5 + $0x1b0] sm:$0xf]  ;;  %v2385_v1 = vld [vmem:[#allocation5 + $0x1b8] sm:$0xf0]  ;;  %v2030_v5 = vor.u32 %v2361_v63, %v2029_v61  ;;  %v1921_v7 = vld [vmem:[#allocation5 + $0x18] sm:$0xf] }
  0x3f   : > { %1068 = vmatpush.bf16.msra.mxu1 %v2054_v45  ;;  %v2221_v2 = vld [vmem:[#allocation5 + $0x270] sm:$0xf]  ;;  %v2409_v3 = vld [vmem:[#allocation5 + $0x278] sm:$0xf0]  ;;  %v2126_v6 = vor.u32 %v2385_v1, %v2125_v0  ;;  %v2334_v8 = vld [vmem:[#allocation5 + $0x20] sm:$0xf0] }
  0x40   : > { %1117 = vmatpush.bf16.msra.mxu2 %v2150_v46  ;;  %v2017_v9 = vld [vmem:[#allocation5 + $0xd8] sm:$0xf]  ;;  %v2222_v10 = vor.u32 %v2409_v3, %v2221_v2  ;;  %v2358_v11 = vld [vmem:[#allocation5 + $0xe0] sm:$0xf0]  ;;  %v1909_v16 = vld [vmem:[#allocation5] sm:$0xf]  ;;  %v1922_v17 = vor.u32 %v2334_v8, %v1921_v7 }
  0x41   : > { %1166 = vmatpush.bf16.msra.mxu3 %v2246_v50  ;;  %v2113_v12 = vld [vmem:[#allocation5 + $0x198] sm:$0xf]  ;;  %v2382_v13 = vld [vmem:[#allocation5 + $0x1a0] sm:$0xf0]  ;;  %v2331_v18 = vld [vmem:[#allocation5 + $0x8] sm:$0xf0]  ;;  %v2018_v21 = vor.u32 %v2358_v11, %v2017_v9 }
  0x42   : > { %1020 = vmatpush.bf16.msra.mxu0 %v1946_v56  ;;  %v2209_v14 = vld [vmem:[#allocation5 + $0x258] sm:$0xf]  ;;  %v2406_v15 = vld [vmem:[#allocation5 + $0x260] sm:$0xf0]  ;;  %v2005_v19 = vld [vmem:[#allocation5 + $0xc0] sm:$0xf]  ;;  %v2114_v22 = vor.u32 %v2382_v13, %v2113_v12  ;;  %v1910_v34 = vor.u32 %v2331_v18, %v1909_v16 }
  0x43   : > { %1069 = vmatpush.bf16.msra.mxu1 %v2042_v57  ;;  %v2355_v20 = vld [vmem:[#allocation5 + $0xc8] sm:$0xf0]  ;;  %v2101_v23 = vld [vmem:[#allocation5 + $0x180] sm:$0xf]  ;;  %v2210_v26 = vor.u32 %v2406_v15, %v2209_v14  ;;  %v2300_v29 = vld [vmem:[%s2744_s14 + $0xc] sm:$0xf0] }
  0x44   : > { %1118 = vmatpush.bf16.msra.mxu2 %v2138_v58  ;;  %v2379_v24 = vld [vmem:[#allocation5 + $0x188] sm:$0xf0]  ;;  %v2197_v25 = vld [vmem:[#allocation5 + $0x240] sm:$0xf]  ;;  %v2298_v30 = vld [vmem:[%s2744_s14 + $0x4] sm:$0xf]  ;;  %v2006_v38 = vor.u32 %v2355_v20, %v2005_v19 }
  0x45   : > { %1167 = vmatpush.bf16.msra.mxu3 %v2234_v62  ;;  %v2403_v27 = vld [vmem:[#allocation5 + $0x248] sm:$0xf0]  ;;  %v1781_v28 = vld [vmem:[%s2744_s14] sm:$0xf]  ;;  %v1783_v31 = vld [vmem:[%s2744_s14 + $0x10] sm:$0xf0]  ;;  %v2102_v39 = vor.u32 %v2379_v24, %v2101_v23 }
  0x46   : > { %1021 = vmatpush.bf16.msra.mxu0 %v1934_v4  ;;  %v2399_v32 = vld [vmem:[#allocation5 + $0x22c] sm:$0xf]  ;;  %v2187_v33 = vld [vmem:[#allocation5 + $0x234] sm:$0xf0]  ;;  %v1789_v35 = vld [vmem:[%s2744_s14 + $0x8] sm:$0xf]  ;;  %v2198_v43 = vor.u32 %v2403_v27, %v2197_v25  ;;  %v2762_v48 = vor.u32 %v2300_v29, %v1781_v28  ;;  %v2764_v53 = vor.u32 %v2298_v30, %v1783_v31 }
  0x47   : > { %1070 = vmatpush.bf16.msra.mxu1 %v2030_v5  ;;  %v2423_v36 = vld [vmem:[#allocation5 + $0x2ec] sm:$0xf]  ;;  %v2283_v37 = vld [vmem:[#allocation5 + $0x2f4] sm:$0xf0]  ;;  %v1791_v42 = vld [vmem:[%s2744_s14 + $0x18] sm:$0xf0]  ;;  %v2190_v44 = vor.u32 %v2399_v32, %v2187_v33 }
  0x48   : > { %1119 = vmatpush.bf16.msra.mxu2 %v2126_v6  ;;  %v2301_v40 = vld [vmem:[%s2744_s14 + $0x14] sm:$0xf0]  ;;  %v2299_v41 = vld [vmem:[%s2744_s14 + $0xc] sm:$0xf]  ;;  %v2286_v49 = vor.u32 %v2423_v36, %v2283_v37  ;;  %v2396_v51 = vld [vmem:[#allocation5 + $0x214] sm:$0xf] }
  0x49   : > { %1168 = vmatpush.bf16.msra.mxu3 %v2222_v10  ;;  %v2351_v45 = vld [vmem:[#allocation5 + $0xac] sm:$0xf]  ;;  %v1995_v46 = vld [vmem:[#allocation5 + $0xb4] sm:$0xf0]  ;;  %v2175_v52 = vld [vmem:[#allocation5 + $0x21c] sm:$0xf0]  ;;  %v2766_v54 = vor.u32 %v2301_v40, %v1789_v35  ;;  %v2768_v57 = vor.u32 %v2299_v41, %v1791_v42 }
  0x4a   : > { %1022 = vmatpush.bf16.msra.mxu0 %v1922_v17  ;;  %v2375_v47 = vld [vmem:[#allocation5 + $0x16c] sm:$0xf]  ;;  %v2091_v50 = vld [vmem:[#allocation5 + $0x174] sm:$0xf0]  ;;  %v2420_v55 = vld [vmem:[#allocation5 + $0x2d4] sm:$0xf]  ;;  %v1998_v58 = vor.u32 %v2351_v45, %v1995_v46  ;;  %v2178_v60 = vor.u32 %v2396_v51, %v2175_v52 }
  0x4b   : > { %1071 = vmatpush.bf16.msra.mxu1 %v2018_v21  ;;  %v2271_v56 = vld [vmem:[#allocation5 + $0x2dc] sm:$0xf0]  ;;  %v2094_v59 = vor.u32 %v2375_v47, %v2091_v50  ;;  %v2348_v61 = vld [vmem:[#allocation5 + $0x94] sm:$0xf]  ;;  %v2393_v3 = vld [vmem:[#allocation5 + $0x1fc] sm:$0xf] }
  0x4c   : > { %1120 = vmatpush.bf16.msra.mxu2 %v2114_v22  ;;  %v1983_v62 = vld [vmem:[#allocation5 + $0x9c] sm:$0xf0]  ;;  %v2274_v63 = vor.u32 %v2420_v55, %v2271_v56  ;;  %v2372_v0 = vld [vmem:[#allocation5 + $0x154] sm:$0xf]  ;;  %v2163_v4 = vld [vmem:[#allocation5 + $0x204] sm:$0xf0] }
  0x4d   : > { %1169 = vmatpush.bf16.msra.mxu3 %v2210_v26  ;;  %v2079_v1 = vld [vmem:[#allocation5 + $0x15c] sm:$0xf0]  ;;  %v1986_v2 = vor.u32 %v2348_v61, %v1983_v62  ;;  %v2417_v5 = vld [vmem:[#allocation5 + $0x2bc] sm:$0xf]  ;;  %v2166_v7 = vor.u32 %v2393_v3, %v2163_v4  ;;  %v2259_v8 = vld [vmem:[#allocation5 + $0x2c4] sm:$0xf0] }
  0x4e   : > { %1023 = vmatpush.bf16.msra.mxu0 %v1910_v34  ;;  %v2082_v6 = vor.u32 %v2372_v0, %v2079_v1  ;;  %v2345_v9 = vld [vmem:[#allocation5 + $0x7c] sm:$0xf]  ;;  %v1971_v10 = vld [vmem:[#allocation5 + $0x84] sm:$0xf0]  ;;  %v2262_v11 = vor.u32 %v2417_v5, %v2259_v8  ;;  %v1797_v16 = vld [vmem:[%s2744_s14 + $0x20] sm:$0xf] }
  0x4f   : > { %1072 = vmatpush.bf16.msra.mxu1 %v2006_v38  ;;  %v2369_v12 = vld [vmem:[#allocation5 + $0x13c] sm:$0xf]  ;;  %v2067_v13 = vld [vmem:[#allocation5 + $0x144] sm:$0xf0]  ;;  %v1974_v14 = vor.u32 %v2345_v9, %v1971_v10  ;;  %v2304_v17 = vld [vmem:[%s2744_s14 + $0x2c] sm:$0xf0] }
  0x50   : > { %1121 = vmatpush.bf16.msra.mxu2 %v2102_v39  ;;  %v2070_v15 = vor.u32 %v2369_v12, %v2067_v13  ;;  %v2302_v18 = vld [vmem:[%s2744_s14 + $0x24] sm:$0xf]  ;;  %v1799_v19 = vld [vmem:[%s2744_s14 + $0x30] sm:$0xf0]  ;;  %v1805_v20 = vld [vmem:[%s2744_s14 + $0x28] sm:$0xf]  ;;  %v2782_v24 = vor.u32 %v2304_v17, %v1797_v16 }
  0x51   : > { %1170 = vmatpush.bf16.msra.mxu3 %v2198_v43  ;;  %1024 = vmatmul.bf16.vlgmr.msra.gmra.mxu0 %v2762_v48  ;;  %v2305_v21 = vld [vmem:[%s2744_s14 + $0x34] sm:$0xf0]  ;;  %v2303_v22 = vld [vmem:[%s2744_s14 + $0x2c] sm:$0xf]  ;;  %v1807_v23 = vld [vmem:[%s2744_s14 + $0x38] sm:$0xf0]  ;;  %v2784_v25 = vor.u32 %v2302_v18, %v1799_v19 }
  0x52   : > { %1073 = vmatmul.bf16.vlgmr.msra.gmra.mxu1 %v2764_v53  ;;  %1212 = vmatpush.bf16.msrb.mxu0 %v1998_v58  ;;  %v2786_v26 = vor.u32 %v2305_v21, %v1805_v20  ;;  %v2788_v27 = vor.u32 %v2303_v22, %v1807_v23  ;;  %v2390_v28 = vld [vmem:[#allocation5 + $0x1e4] sm:$0xf]  ;;  %v2151_v29 = vld [vmem:[#allocation5 + $0x1ec] sm:$0xf0]  ;;  %v1813_v40 = vld [vmem:[%s2744_s14 + $0x40] sm:$0xf] }
  0x53   : > { %1122 = vmatmul.bf16.vlgmr.msra.gmra.mxu2 %v2766_v54  ;;  %1261 = vmatpush.bf16.msrb.mxu1 %v2094_v59  ;;  %v2414_v30 = vld [vmem:[#allocation5 + $0x2a4] sm:$0xf]  ;;  %v2154_v31 = vor.u32 %v2390_v28, %v2151_v29  ;;  %v2247_v32 = vld [vmem:[#allocation5 + $0x2ac] sm:$0xf0]  ;;  %v1815_v43 = vld [vmem:[%s2744_s14 + $0x50] sm:$0xf0] }
  0x54   : > { %1310 = vmatpush.bf16.msrb.mxu2 %v2190_v44  ;;  %1171 = vmatmul.bf16.vlgmr.msra.gmra.mxu3 %v2768_v57  ;;  %v2342_v33 = vld [vmem:[#allocation5 + $0x64] sm:$0xf]  ;;  %v1959_v34 = vld [vmem:[#allocation5 + $0x6c] sm:$0xf0]  ;;  %v2250_v35 = vor.u32 %v2414_v30, %v2247_v32  ;;  %v1821_v44 = vld [vmem:[%s2744_s14 + $0x48] sm:$0xf] }
  0x55   : > { %1359 = vmatpush.bf16.msrb.mxu3 %v2286_v49  ;;  %v1962_v36 = vor.u32 %v2342_v33, %v1959_v34  ;;  %v2366_v37 = vld [vmem:[#allocation5 + $0x124] sm:$0xf]  ;;  %v2055_v38 = vld [vmem:[#allocation5 + $0x12c] sm:$0xf0]  ;;  %v2309_v45 = vld [vmem:[%s2744_s14 + $0x54] sm:$0xf0] }
  0x56   : > { %1213 = vmatpush.bf16.msrb.mxu0 %v1986_v2  ;;  %v2058_v39 = vor.u32 %v2366_v37, %v2055_v38  ;;  %v2308_v41 = vld [vmem:[%s2744_s14 + $0x4c] sm:$0xf0]  ;;  %v2306_v42 = vld [vmem:[%s2744_s14 + $0x44] sm:$0xf]  ;;  %v2307_v46 = vld [vmem:[%s2744_s14 + $0x4c] sm:$0xf]  ;;  %v2806_v51 = vor.u32 %v2309_v45, %v1821_v44 }
  0x57   : > { %1262 = vmatpush.bf16.msrb.mxu1 %v2082_v6  ;;  %v1823_v47 = vld [vmem:[%s2744_s14 + $0x58] sm:$0xf0]  ;;  %v2802_v49 = vor.u32 %v2308_v41, %v1813_v40  ;;  %v2804_v50 = vor.u32 %v2306_v42, %v1815_v43  ;;  %v2387_v55 = vld [vmem:[#allocation5 + $0x1cc] sm:$0xf]  ;;  %v2139_v56 = vld [vmem:[#allocation5 + $0x1d4] sm:$0xf0] }
  0x58   : > { %1311 = vmatpush.bf16.msrb.mxu2 %v2178_v60  ;;  %v2808_v52 = vor.u32 %v2307_v46, %v1823_v47  ;;  %v2411_v58 = vld [vmem:[#allocation5 + $0x28c] sm:$0xf]  ;;  %v2142_v59 = vor.u32 %v2387_v55, %v2139_v56  ;;  %v2235_v60 = vld [vmem:[#allocation5 + $0x294] sm:$0xf0]  ;;  %v1829_v4 = vld [vmem:[%s2744_s14 + $0x60] sm:$0xf] }
  0x59   : > { %1360 = vmatpush.bf16.msrb.mxu3 %v2274_v63  ;;  %v2339_v61 = vld [vmem:[#allocation5 + $0x4c] sm:$0xf]  ;;  %v1947_v62 = vld [vmem:[#allocation5 + $0x54] sm:$0xf0]  ;;  %v2238_v63 = vor.u32 %v2411_v58, %v2235_v60  ;;  %v2312_v5 = vld [vmem:[%s2744_s14 + $0x6c] sm:$0xf0] }
  0x5a   : > { %1214 = vmatpush.bf16.msrb.mxu0 %v1974_v14  ;;  %v1950_v0 = vor.u32 %v2339_v61, %v1947_v62  ;;  %v2363_v1 = vld [vmem:[#allocation5 + $0x10c] sm:$0xf]  ;;  %v2043_v2 = vld [vmem:[#allocation5 + $0x114] sm:$0xf0]  ;;  %v2310_v6 = vld [vmem:[%s2744_s14 + $0x64] sm:$0xf]  ;;  %v2822_v12 = vor.u32 %v2312_v5, %v1829_v4 }
  0x5b   : > { %1263 = vmatpush.bf16.msrb.mxu1 %v2070_v15  ;;  %v2046_v3 = vor.u32 %v2363_v1, %v2043_v2  ;;  %v1837_v8 = vld [vmem:[%s2744_s14 + $0x68] sm:$0xf]  ;;  %v2313_v9 = vld [vmem:[%s2744_s14 + $0x74] sm:$0xf0]  ;;  %v2311_v10 = vld [vmem:[%s2744_s14 + $0x6c] sm:$0xf] }
  0x5c   : > { %1312 = vmatpush.bf16.msrb.mxu2 %v2166_v7  ;;  %v1831_v7 = vld [vmem:[%s2744_s14 + $0x70] sm:$0xf0]  ;;  %v2826_v14 = vor.u32 %v2313_v9, %v1837_v8  ;;  %v2127_v17 = vld [vmem:[#allocation5 + $0x1bc] sm:$0xf0]  ;;  %v2316_v33 = vld [vmem:[%s2744_s14 + $0x8c] sm:$0xf0] }
  0x5d   : > { %1361 = vmatpush.bf16.msrb.mxu3 %v2262_v11  ;;  %v1839_v11 = vld [vmem:[%s2744_s14 + $0x78] sm:$0xf0]  ;;  %v2824_v13 = vor.u32 %v2310_v6, %v1831_v7  ;;  %v2384_v16 = vld [vmem:[#allocation5 + $0x1b4] sm:$0xf]  ;;  %v2223_v20 = vld [vmem:[#allocation5 + $0x27c] sm:$0xf0] }
  0x5e   : > { %1215 = vmatpush.bf16.msrb.mxu0 %v1962_v36  ;;  %v2828_v15 = vor.u32 %v2311_v10, %v1839_v11  ;;  %v2408_v18 = vld [vmem:[#allocation5 + $0x274] sm:$0xf]  ;;  %v2130_v19 = vor.u32 %v2384_v16, %v2127_v17  ;;  %v1935_v22 = vld [vmem:[#allocation5 + $0x3c] sm:$0xf0]  ;;  %v2314_v34 = vld [vmem:[%s2744_s14 + $0x84] sm:$0xf] }
  0x5f   : > { %1264 = vmatpush.bf16.msrb.mxu1 %v2058_v39  ;;  %v2336_v21 = vld [vmem:[#allocation5 + $0x34] sm:$0xf]  ;;  %v2226_v23 = vor.u32 %v2408_v18, %v2223_v20  ;;  %v2031_v30 = vld [vmem:[#allocation5 + $0xfc] sm:$0xf0]  ;;  %v1853_v36 = vld [vmem:[%s2744_s14 + $0x88] sm:$0xf] }
  0x60   : > { %1313 = vmatpush.bf16.msrb.mxu2 %v2154_v31  ;;  %v1938_v28 = vor.u32 %v2336_v21, %v1935_v22  ;;  %v2360_v29 = vld [vmem:[#allocation5 + $0xf4] sm:$0xf]  ;;  %v1845_v32 = vld [vmem:[%s2744_s14 + $0x80] sm:$0xf]  ;;  %v2317_v37 = vld [vmem:[%s2744_s14 + $0x94] sm:$0xf0] }
  0x61   : > { %1029 = vmatmul.bf16.gmra.mxu0 %v2782_v24  ;;  %1362 = vmatpush.bf16.msrb.mxu3 %v2250_v35  ;;  %v2034_v31 = vor.u32 %v2360_v29, %v2031_v30  ;;  %v1847_v35 = vld [vmem:[%s2744_s14 + $0x90] sm:$0xf0]  ;;  %v2315_v38 = vld [vmem:[%s2744_s14 + $0x8c] sm:$0xf]  ;;  %v1855_v39 = vld [vmem:[%s2744_s14 + $0x98] sm:$0xf0]  ;;  %v2842_v40 = vor.u32 %v2316_v33, %v1845_v32  ;;  %v2846_v42 = vor.u32 %v2317_v37, %v1853_v36 }
  0x62   : > { %1078 = vmatmul.bf16.gmra.mxu1 %v2784_v25  ;;  %1216 = vmatpush.bf16.msrb.mxu0 %v1950_v0  ;;  %v2844_v41 = vor.u32 %v2314_v34, %v1847_v35  ;;  %v2848_v43 = vor.u32 %v2315_v38, %v1855_v39  ;;  %v2381_v44 = vld [vmem:[#allocation5 + $0x19c] sm:$0xf]  ;;  %v2115_v45 = vld [vmem:[#allocation5 + $0x1a4] sm:$0xf0]  ;;  %v1861_v0 = vld [vmem:[%s2744_s14 + $0xa0] sm:$0xf] }
  0x63   : > { %1127 = vmatmul.bf16.gmra.mxu2 %v2786_v26  ;;  %1265 = vmatpush.bf16.msrb.mxu1 %v2046_v3  ;;  %v2405_v46 = vld [vmem:[#allocation5 + $0x25c] sm:$0xf]  ;;  %v2118_v47 = vor.u32 %v2381_v44, %v2115_v45  ;;  %v2211_v55 = vld [vmem:[#allocation5 + $0x264] sm:$0xf0]  ;;  %v2320_v1 = vld [vmem:[%s2744_s14 + $0xac] sm:$0xf0] }
  0x64   : > { %1176 = vmatmul.bf16.gmra.mxu3 %v2788_v27  ;;  %1314 = vmatpush.bf16.msrb.mxu2 %v2142_v59  ;;  %v2333_v56 = vld [vmem:[#allocation5 + $0x1c] sm:$0xf]  ;;  %v1923_v58 = vld [vmem:[#allocation5 + $0x24] sm:$0xf0]  ;;  %v2214_v59 = vor.u32 %v2405_v46, %v2211_v55  ;;  %v2318_v2 = vld [vmem:[%s2744_s14 + $0xa4] sm:$0xf]  ;;  %v2862_v8 = vor.u32 %v2320_v1, %v1861_v0 }
  0x65   : > { %1363 = vmatpush.bf16.msrb.mxu3 %v2238_v63  ;;  %v1926_v60 = vor.u32 %v2333_v56, %v1923_v58  ;;  %v2357_v61 = vld [vmem:[#allocation5 + $0xdc] sm:$0xf]  ;;  %v2019_v62 = vld [vmem:[#allocation5 + $0xe4] sm:$0xf0]  ;;  %v1863_v3 = vld [vmem:[%s2744_s14 + $0xb0] sm:$0xf0] }
  0x66   : > { %1217 = vmatpush.bf16.msrb.mxu0 %v1938_v28  ;;  %v2022_v63 = vor.u32 %v2357_v61, %v2019_v62  ;;  %v1869_v4 = vld [vmem:[%s2744_s14 + $0xa8] sm:$0xf]  ;;  %v2321_v5 = vld [vmem:[%s2744_s14 + $0xb4] sm:$0xf0]  ;;  %v2319_v6 = vld [vmem:[%s2744_s14 + $0xac] sm:$0xf]  ;;  %v2864_v9 = vor.u32 %v2318_v2, %v1863_v3 }
  0x67   : > { %1266 = vmatpush.bf16.msrb.mxu1 %v2034_v31  ;;  %v1871_v7 = vld [vmem:[%s2744_s14 + $0xb8] sm:$0xf0]  ;;  %v2866_v10 = vor.u32 %v2321_v5, %v1869_v4  ;;  %v2378_v16 = vld [vmem:[#allocation5 + $0x184] sm:$0xf]  ;;  %v2103_v17 = vld [vmem:[#allocation5 + $0x18c] sm:$0xf0] }
  0x68   : > { %1315 = vmatpush.bf16.msrb.mxu2 %v2130_v19  ;;  %v2868_v11 = vor.u32 %v2319_v6, %v1871_v7  ;;  %v2402_v18 = vld [vmem:[#allocation5 + $0x244] sm:$0xf]  ;;  %v2106_v19 = vor.u32 %v2378_v16, %v2103_v17  ;;  %v2199_v20 = vld [vmem:[#allocation5 + $0x24c] sm:$0xf0]  ;;  %v1877_v32 = vld [vmem:[%s2744_s14 + $0xc0] sm:$0xf] }
  0x69   : > { %1364 = vmatpush.bf16.msrb.mxu3 %v2226_v23  ;;  %v2330_v21 = vld [vmem:[#allocation5 + $0x4] sm:$0xf]  ;;  %v1911_v22 = vld [vmem:[#allocation5 + $0xc] sm:$0xf0]  ;;  %v2202_v23 = vor.u32 %v2402_v18, %v2199_v20  ;;  %v1879_v35 = vld [vmem:[%s2744_s14 + $0xd0] sm:$0xf0] }
  0x6a   : > { %1218 = vmatpush.bf16.msrb.mxu0 %v1926_v60  ;;  %v1914_v28 = vor.u32 %v2330_v21, %v1911_v22  ;;  %v2354_v29 = vld [vmem:[#allocation5 + $0xc4] sm:$0xf]  ;;  %v2007_v30 = vld [vmem:[#allocation5 + $0xcc] sm:$0xf0]  ;;  %v1885_v36 = vld [vmem:[%s2744_s14 + $0xc8] sm:$0xf] }
  0x6b   : > { %1267 = vmatpush.bf16.msrb.mxu1 %v2022_v63  ;;  %v2010_v31 = vor.u32 %v2354_v29, %v2007_v30  ;;  %v2324_v33 = vld [vmem:[%s2744_s14 + $0xcc] sm:$0xf0]  ;;  %v2322_v34 = vld [vmem:[%s2744_s14 + $0xc4] sm:$0xf]  ;;  %v2325_v37 = vld [vmem:[%s2744_s14 + $0xd4] sm:$0xf0] }
  0x6c   : > { %1316 = vmatpush.bf16.msrb.mxu2 %v2118_v47  ;;  %v2323_v38 = vld [vmem:[%s2744_s14 + $0xcc] sm:$0xf]  ;;  %v1887_v39 = vld [vmem:[%s2744_s14 + $0xd8] sm:$0xf0]  ;;  %v2882_v44 = vor.u32 %v2324_v33, %v1877_v32  ;;  %v2884_v45 = vor.u32 %v2322_v34, %v1879_v35  ;;  %v2886_v46 = vor.u32 %v2325_v37, %v1885_v36  ;;  %v2193_v55 = vld [vmem:[#allocation5 + $0x230] sm:$0xf] }
  0x6d   : > { %1365 = vmatpush.bf16.msrb.mxu3 %v2214_v59  ;;  %v2888_v47 = vor.u32 %v2323_v38, %v1887_v39  ;;  %v2401_v56 = vld [vmem:[#allocation5 + $0x238] sm:$0xf0]  ;;  %v2289_v58 = vld [vmem:[#allocation5 + $0x2f0] sm:$0xf]  ;;  %v1893_v3 = vld [vmem:[%s2744_s14 + $0xe0] sm:$0xf] }
  0x6e   : > { %1219 = vmatpush.bf16.msrb.mxu0 %v1914_v28  ;;  %v2194_v59 = vor.u32 %v2401_v56, %v2193_v55  ;;  %v2425_v60 = vld [vmem:[#allocation5 + $0x2f8] sm:$0xf0]  ;;  %v2001_v62 = vld [vmem:[#allocation5 + $0xb0] sm:$0xf]  ;;  %v2326_v5 = vld [vmem:[%s2744_s14 + $0xe4] sm:$0xf] }
  0x6f   : > { %1268 = vmatpush.bf16.msrb.mxu1 %v2010_v31  ;;  %v2290_v61 = vor.u32 %v2425_v60, %v2289_v58  ;;  %v2353_v63 = vld [vmem:[#allocation5 + $0xb8] sm:$0xf0]  ;;  %v2097_v0 = vld [vmem:[#allocation5 + $0x170] sm:$0xf]  ;;  %v1895_v7 = vld [vmem:[%s2744_s14 + $0xf0] sm:$0xf0] }
  0x70   : > { %1317 = vmatpush.bf16.msrb.mxu2 %v2106_v19  ;;  %v2002_v1 = vor.u32 %v2353_v63, %v2001_v62  ;;  %v2377_v2 = vld [vmem:[#allocation5 + $0x178] sm:$0xf0]  ;;  %v2328_v4 = vld [vmem:[%s2744_s14 + $0xec] sm:$0xf0]  ;;  %v1901_v16 = vld [vmem:[%s2744_s14 + $0xe8] sm:$0xf]  ;;  %v2904_v21 = vor.u32 %v2326_v5, %v1895_v7 }
  0x71   : > { %1034 = vmatmul.bf16.gmra.mxu0 %v2802_v49  ;;  %1366 = vmatpush.bf16.msrb.mxu3 %v2202_v23  ;;  %v2098_v6 = vor.u32 %v2377_v2, %v2097_v0  ;;  %v2329_v17 = vld [vmem:[%s2744_s14 + $0xf4] sm:$0xf0]  ;;  %v2327_v18 = vld [vmem:[%s2744_s14 + $0xec] sm:$0xf]  ;;  %v1903_v19 = vld [vmem:[%s2744_s14 + $0xf8] sm:$0xf0]  ;;  %v2902_v20 = vor.u32 %v2328_v4, %v1893_v3 }
  0x72   : > { %1083 = vmatmul.bf16.gmra.mxu1 %v2804_v50  ;;  %1408 = vmatpush.bf16.msra.mxu0 %v2002_v1  ;;  %v2906_v22 = vor.u32 %v2329_v17, %v1901_v16  ;;  %v2908_v23 = vor.u32 %v2327_v18, %v1903_v19  ;;  %v2181_v28 = vld [vmem:[#allocation5 + $0x218] sm:$0xf]  ;;  %v2398_v29 = vld [vmem:[#allocation5 + $0x220] sm:$0xf0]  ;;  %v2395_v60 = vld [vmem:[#allocation5 + $0x208] sm:$0xf0] }
  0x73   : > { %1132 = vmatmul.bf16.gmra.mxu2 %v2806_v51  ;;  %1457 = vmatpush.bf16.msra.mxu1 %v2098_v6  ;;  %v2277_v30 = vld [vmem:[#allocation5 + $0x2d8] sm:$0xf]  ;;  %v2182_v31 = vor.u32 %v2398_v29, %v2181_v28  ;;  %v2422_v32 = vld [vmem:[#allocation5 + $0x2e0] sm:$0xf0]  ;;  %v2419_v63 = vld [vmem:[#allocation5 + $0x2c8] sm:$0xf0] }
  0x74   : > { %1181 = vmatmul.bf16.gmra.mxu3 %v2808_v52  ;;  %1506 = vmatpush.bf16.msra.mxu2 %v2194_v59  ;;  %v2278_v33 = vor.u32 %v2422_v32, %v2277_v30  ;;  %v1989_v34 = vld [vmem:[#allocation5 + $0x98] sm:$0xf]  ;;  %v2350_v35 = vld [vmem:[#allocation5 + $0xa0] sm:$0xf0]  ;;  %v2169_v59 = vld [vmem:[#allocation5 + $0x200] sm:$0xf] }
  0x75   : > { %1555 = vmatpush.bf16.msra.mxu3 %v2290_v61  ;;  %v2085_v36 = vld [vmem:[#allocation5 + $0x158] sm:$0xf]  ;;  %v1990_v37 = vor.u32 %v2350_v35, %v1989_v34  ;;  %v2374_v38 = vld [vmem:[#allocation5 + $0x160] sm:$0xf0]  ;;  %v2265_v61 = vld [vmem:[#allocation5 + $0x2c0] sm:$0xf]  ;;  %v2170_v62 = vor.u32 %v2395_v60, %v2169_v59 }
  0x76   : > { %v2086_v39 = vor.u32 %v2374_v38, %v2085_v36  ;;  %v2266_v1 = vor.u32 %v2419_v63, %v2265_v61  ;;  %v1977_v16 = vld [vmem:[#allocation5 + $0x80] sm:$0xf]  ;;  %v2347_v17 = vld [vmem:[#allocation5 + $0x88] sm:$0xf0]  ;;  %v2392_v38 = vld [vmem:[#allocation5 + $0x1f0] sm:$0xf0] }
  0x77   : > { %1409 = vmatpush.bf16.msra.mxu0 %v1990_v37  ;;  %v2073_v18 = vld [vmem:[#allocation5 + $0x140] sm:$0xf]  ;;  %v1978_v19 = vor.u32 %v2347_v17, %v1977_v16  ;;  %v2371_v28 = vld [vmem:[#allocation5 + $0x148] sm:$0xf0]  ;;  %v2157_v37 = vld [vmem:[#allocation5 + $0x1e8] sm:$0xf] }
  0x78   : > { %1507 = vmatpush.bf16.msra.mxu2 %v2182_v31  ;;  %1458 = vmatpush.bf16.msra.mxu1 %v2086_v39  ;;  %v2074_v29 = vor.u32 %v2371_v28, %v2073_v18  ;;  %v2253_v39 = vld [vmem:[#allocation5 + $0x2a8] sm:$0xf]  ;;  %s2426_s15 = smul.u32 192, %s2740_s5  ;;  %s2571_s3 = scalar_lea.hbm %s3097_s2, 384 }
  0x79   : > { %1556 = vmatpush.bf16.msra.mxu3 %v2278_v33  ;;  %s2427_s8 = smul.u32 192, %s2666_s13  ;;  %s1669_s13 = scalar_lea.sflag [#allocation4], %s2740_s5 }
  0x7a   : > { %s2984_s20 = scalar_lea.vmem [#allocation7], %s2426_s15 }
  0x7b   : > { %1410 = vmatpush.bf16.msra.mxu0 %v1978_v19  ;;  %s1681_s19 = scalar_lea.hbm %s3097_s2, %s2427_s8  ;;  %s1682_s21 = sshll.u32 %s2984_s20, 4  ;;  %s1683_s21 = int_to_ptr.vmem [resolvable:$true] %s1682_s21 }
  0x7c   : > { %1508 = vmatpush.bf16.msra.mxu2 %v2170_v62  ;;  %1459 = vmatpush.bf16.msra.mxu1 %v2074_v29  ;;  %s1684_s22 = sshll.u32 %s1681_s19, 4  ;;  %s1685_s22 = int_to_ptr.hbm [resolvable:$true] %s1684_s22 }
  0x7d   : > { %1557 = vmatpush.bf16.msra.mxu3 %v2266_v1  ;;  %s2565_s24 = sshra.s32 %s1685_s22, 4  ;;  %s2566_s24 = int_to_ptr.hbm [resolvable:$true] %s2565_s24 }
  0x7e   : > { %s2567_s25 = scalar_lea.hbm %s2566_s24, 192  ;;  %p2572_p11 = scmp.lt.s32.totalorder %s2566_s24, %s3097_s2 }
  0x7f   : > { %p2568_p1 = scmp.ne.s32.totalorder %s2566_s24, %s2567_s25  ;;  %p2573_p9 = scmp.lt.s32.totalorder %s2571_s3, %s2567_s25 }
  0x81   : > { %1039 = vmatmul.bf16.gmra.mxu0 %v2822_v12  ;;  %p2569_p4 = pnand %p2568_p1, %p2712_p7  ;;  %p2574_p2 = por %p2573_p9, %p2572_p11 }
  0x82   : > { %1088 = vmatmul.bf16.gmra.mxu1 %v2824_v13 }
  0x83   : > { %1137 = vmatmul.bf16.gmra.mxu2 %v2826_v14  ;;  %p2570_p8 = pneg %p2569_p4 }
  0x84   : > { %1186 = vmatmul.bf16.gmra.mxu3 %v2828_v15 }
  0x85   : > { %p2575_p10 = pnand %p2574_p2, %p2570_p8 }
  0x91   : > { %1044 = vmatmul.bf16.gmra.mxu0 %v2842_v40 }
  0x92   : > { %1093 = vmatmul.bf16.gmra.mxu1 %v2844_v41 }
  0x93   : > { %1142 = vmatmul.bf16.gmra.mxu2 %v2846_v42 }
  0x94   : > { %1191 = vmatmul.bf16.gmra.mxu3 %v2848_v43 }
  0xa1   : > { %1049 = vmatmul.bf16.gmra.mxu0 %v2862_v8 }
  0xa2   : > { %1098 = vmatmul.bf16.gmra.mxu1 %v2864_v9 }
  0xa3   : > { %1147 = vmatmul.bf16.gmra.mxu2 %v2866_v10 }
  0xa4   : > { %1196 = vmatmul.bf16.gmra.mxu3 %v2868_v11 }
  0xb1   : > { %1054 = vmatmul.bf16.gmra.mxu0 %v2882_v44 }
  0xb2   : > { %1103 = vmatmul.bf16.gmra.mxu1 %v2884_v45 }
  0xb3   : > { %1152 = vmatmul.bf16.gmra.mxu2 %v2886_v46 }
  0xb4   : > { %1201 = vmatmul.bf16.gmra.mxu3 %v2888_v47 }
  0xc1   : > { %1059 = vmatmul.bf16.gmra.mxu0 %v2902_v20 }
  0xc2   : > { %1108 = vmatmul.bf16.gmra.mxu1 %v2904_v21 }
  0xc3   : > { %1157 = vmatmul.bf16.gmra.mxu2 %v2906_v22 }
  0xc4   : > { %1206 = vmatmul.bf16.gmra.mxu3 %v2908_v23 }
  0xce   : > { %v1025_v55 = vpop.f32.mrf.mxu0 }
  0xcf   : > { %v1074_v56 = vpop.f32.mrf.mxu1 }
  0xd0   : > { %v1075_v58 = vadd.f32 %v1074_v56, %v1025_v55  ;;  %v2158_v55 = vor.u32 %v2392_v38, %v2157_v37  ;;  %v2416_v56 = vld [vmem:[#allocation5 + $0x2b0] sm:$0xf0]  ;;  %v2413_v37 = vld [vmem:[#allocation5 + $0x298] sm:$0xf0] }
  0xd1   : > { %1220 = vmatmul.bf16.vlgmr.msrb.gmra.mxu0 %v2762_v48  ;;  %v2254_v59 = vor.u32 %v2416_v56, %v2253_v39 }
  0xd2   : > { %1269 = vmatmul.bf16.vlgmr.msrb.gmra.mxu1 %v2764_v53  ;;  %1509 = vmatpush.bf16.msra.mxu2 %v2158_v55 }
  0xd3   : > { %1318 = vmatmul.bf16.vlgmr.msrb.gmra.mxu2 %v2766_v54  ;;  %1558 = vmatpush.bf16.msra.mxu3 %v2254_v59 }
  0xd4   : > { %1367 = vmatmul.bf16.vlgmr.msrb.gmra.mxu3 %v2768_v57 }
  0xd6   : > { %v1123_v0 = vpop.f32.mrf.mxu2  ;;  %v1027_v4 = vpop.f32.mrf.mxu0 }
  0xd7   : > { %v1124_v2 = vadd.f32 %v1123_v0, %v1075_v58  ;;  %v1172_v3 = vpop.f32.mrf.mxu3  ;;  %v1076_v5 = vpop.f32.mrf.mxu1 }
  0xd8   : > { %v1077_v7 = vadd.f32 %v1076_v5, %v1027_v4  ;;  %v2061_v4 = vld [vmem:[#allocation5 + $0x128] sm:$0xf] }
  0xd9   : > { %v2918_v6 = vadd.f32 %v1172_v3, %v1124_v2  ;;  %v1965_v2 = vld [vmem:[#allocation5 + $0x68] sm:$0xf]  ;;  %v2344_v3 = vld [vmem:[#allocation5 + $0x70] sm:$0xf0] }
  0xda   : > { %v1966_v5 = vor.u32 %v2344_v3, %v1965_v2  ;;  %v2365_v3 = vld [vmem:[#allocation5 + $0x118] sm:$0xf0] }
  0xdc   : > { %1411 = vmatpush.bf16.msra.mxu0 %v1966_v5 }
  0xde   : > { %v1125_v30 = vpop.f32.mrf.mxu2  ;;  %v1030_v33 = vpop.f32.mrf.mxu0 }
  0xdf   : > { %v1126_v31 = vadd.f32 %v1125_v30, %v1077_v7  ;;  %v1174_v32 = vpop.f32.mrf.mxu3  ;;  %v1079_v34 = vpop.f32.mrf.mxu1  ;;  %v2368_v7 = vld [vmem:[#allocation5 + $0x130] sm:$0xf0] }
  0xe0   : > { %v1080_v36 = vadd.f32 %v1079_v34, %v1030_v33  ;;  %v2062_v16 = vor.u32 %v2368_v7, %v2061_v4  ;;  %v2389_v33 = vld [vmem:[#allocation5 + $0x1d8] sm:$0xf0]  ;;  %v2241_v34 = vld [vmem:[#allocation5 + $0x290] sm:$0xf] }
  0xe1   : > { %v2920_v35 = vadd.f32 %v1174_v32, %v1126_v31  ;;  %1225 = vmatmul.bf16.gmra.mxu0 %v2782_v24  ;;  %v2145_v32 = vld [vmem:[#allocation5 + $0x1d0] sm:$0xf]  ;;  %v2242_v39 = vor.u32 %v2413_v37, %v2241_v34  ;;  %v2410_v34 = vld [vmem:[#allocation5 + $0x280] sm:$0xf0] }
  0xe2   : > { %1274 = vmatmul.bf16.gmra.mxu1 %v2784_v25 }
  0xe3   : > { %1323 = vmatmul.bf16.gmra.mxu2 %v2786_v26  ;;  %1460 = vmatpush.bf16.msra.mxu1 %v2062_v16 }
  0xe4   : > { %1372 = vmatmul.bf16.gmra.mxu3 %v2788_v27 }
  0xe5   : > { %1559 = vmatpush.bf16.msra.mxu3 %v2242_v39 }
  0xe6   : > { %v1128_v58 = vpop.f32.mrf.mxu2  ;;  %v1032_v62 = vpop.f32.mrf.mxu0 }
  0xe7   : > { %v1129_v60 = vadd.f32 %v1128_v58, %v1080_v36  ;;  %v1177_v61 = vpop.f32.mrf.mxu3  ;;  %v1081_v63 = vpop.f32.mrf.mxu1  ;;  %v2146_v36 = vor.u32 %v2389_v33, %v2145_v32  ;;  %v2229_v32 = vld [vmem:[#allocation5 + $0x278] sm:$0xf] }
  0xe8   : > { %v1082_v1 = vadd.f32 %v1081_v63, %v1032_v62  ;;  %v1953_v62 = vld [vmem:[#allocation5 + $0x50] sm:$0xf]  ;;  %v2341_v63 = vld [vmem:[#allocation5 + $0x58] sm:$0xf0]  ;;  %v2230_v37 = vor.u32 %v2410_v34, %v2229_v32  ;;  %v2217_v32 = vld [vmem:[#allocation5 + $0x260] sm:$0xf] }
  0xe9   : > { %v2926_v0 = vadd.f32 %v1177_v61, %v1129_v60  ;;  %1510 = vmatpush.bf16.msra.mxu2 %v2146_v36  ;;  %v1954_v2 = vor.u32 %v2341_v63, %v1953_v62  ;;  %v2338_v62 = vld [vmem:[#allocation5 + $0x40] sm:$0xf0]  ;;  %v2037_v63 = vld [vmem:[#allocation5 + $0xf8] sm:$0xf]  ;;  %v2407_v34 = vld [vmem:[#allocation5 + $0x268] sm:$0xf0] }
  0xea   : > { %1560 = vmatpush.bf16.msra.mxu3 %v2230_v37  ;;  %v2218_v37 = vor.u32 %v2407_v34, %v2217_v32  ;;  %v2109_v32 = vld [vmem:[#allocation5 + $0x188] sm:$0xf] }
  0xeb   : > { %1412 = vmatpush.bf16.msra.mxu0 %v1954_v2  ;;  %v2362_v2 = vld [vmem:[#allocation5 + $0x100] sm:$0xf0]  ;;  %v2205_v34 = vld [vmem:[#allocation5 + $0x248] sm:$0xf] }
  0xee   : > { %v1130_v17 = vpop.f32.mrf.mxu2  ;;  %v1035_v28 = vpop.f32.mrf.mxu0  ;;  %1561 = vmatpush.bf16.msra.mxu3 %v2218_v37  ;;  %v2404_v37 = vld [vmem:[#allocation5 + $0x250] sm:$0xf0] }
  0xef   : > { %v1131_v18 = vadd.f32 %v1130_v17, %v1082_v1  ;;  %v1179_v19 = vpop.f32.mrf.mxu3  ;;  %v1084_v29 = vpop.f32.mrf.mxu1  ;;  %v2049_v1 = vld [vmem:[#allocation5 + $0x110] sm:$0xf] }
  0xf0   : > { %v1085_v31 = vadd.f32 %v1084_v29, %v1035_v28  ;;  %v2050_v4 = vor.u32 %v2365_v3, %v2049_v1  ;;  %v2133_v29 = vld [vmem:[#allocation5 + $0x1b8] sm:$0xf]  ;;  %v2038_v3 = vor.u32 %v2362_v2, %v2037_v63  ;;  %v2335_v63 = vld [vmem:[#allocation5 + $0x28] sm:$0xf0] }
  0xf1   : > { %v2928_v30 = vadd.f32 %v1179_v19, %v1131_v18  ;;  %1230 = vmatmul.bf16.gmra.mxu0 %v2802_v49 }
  0xf2   : > { %1279 = vmatmul.bf16.gmra.mxu1 %v2804_v50 }
  0xf3   : > { %1328 = vmatmul.bf16.gmra.mxu2 %v2806_v51  ;;  %1461 = vmatpush.bf16.msra.mxu1 %v2050_v4 }
  0xf4   : > { %1377 = vmatmul.bf16.gmra.mxu3 %v2808_v52 }
  0xf6   : > { %v1133_v38 = vpop.f32.mrf.mxu2  ;;  %v1037_v58 = vpop.f32.mrf.mxu0 }
  0xf7   : > { %v1134_v55 = vadd.f32 %v1133_v38, %v1085_v31  ;;  %v1182_v56 = vpop.f32.mrf.mxu3  ;;  %v1086_v59 = vpop.f32.mrf.mxu1  ;;  %v2386_v31 = vld [vmem:[#allocation5 + $0x1c0] sm:$0xf0]  ;;  %1462 = vmatpush.bf16.msra.mxu1 %v2038_v3  ;;  %v2359_v3 = vld [vmem:[#allocation5 + $0xe8] sm:$0xf0] }
  0xf8   : > { %v1087_v61 = vadd.f32 %v1086_v59, %v1037_v58  ;;  %v2134_v33 = vor.u32 %v2386_v31, %v2133_v29  ;;  %v2121_v29 = vld [vmem:[#allocation5 + $0x1a0] sm:$0xf]  ;;  %v2383_v31 = vld [vmem:[#allocation5 + $0x1a8] sm:$0xf0] }
  0xf9   : > { %v2934_v60 = vadd.f32 %v1182_v56, %v1134_v55 }
  0xfa   : > { %1511 = vmatpush.bf16.msra.mxu2 %v2134_v33  ;;  %v2122_v33 = vor.u32 %v2383_v31, %v2121_v29 }
  0xfe   : > { %v1135_v5 = vpop.f32.mrf.mxu2  ;;  %v1040_v17 = vpop.f32.mrf.mxu0  ;;  %1512 = vmatpush.bf16.msra.mxu2 %v2122_v33  ;;  %v2380_v33 = vld [vmem:[#allocation5 + $0x190] sm:$0xf0] }
  0xff   : > { %v1136_v7 = vadd.f32 %v1135_v5, %v1087_v61  ;;  %v1184_v16 = vpop.f32.mrf.mxu3  ;;  %v1089_v18 = vpop.f32.mrf.mxu1  ;;  %v1941_v61 = vld [vmem:[#allocation5 + $0x38] sm:$0xf] }
 0x100   : > { %v1090_v28 = vadd.f32 %v1089_v18, %v1040_v17  ;;  %v1942_v1 = vor.u32 %v2338_v62, %v1941_v61  ;;  %v1929_v62 = vld [vmem:[#allocation5 + $0x20] sm:$0xf] }
 0x101   : > { %v2936_v19 = vadd.f32 %v1184_v16, %v1136_v7  ;;  %1235 = vmatmul.bf16.gmra.mxu0 %v2822_v12  ;;  %v1930_v2 = vor.u32 %v2335_v63, %v1929_v62 }
 0x102   : > { %1284 = vmatmul.bf16.gmra.mxu1 %v2824_v13  ;;  %1413 = vmatpush.bf16.msra.mxu0 %v1942_v1  ;;  %v2025_v1 = vld [vmem:[#allocation5 + $0xe0] sm:$0xf] }
 0x103   : > { %1333 = vmatmul.bf16.gmra.mxu2 %v2826_v14 }
 0x104   : > { %1382 = vmatmul.bf16.gmra.mxu3 %v2828_v15 }
 0x106   : > { %v1138_v36 = vpop.f32.mrf.mxu2  ;;  %v1042_v55 = vpop.f32.mrf.mxu0  ;;  %1414 = vmatpush.bf16.msra.mxu0 %v1930_v2  ;;  %v1917_v2 = vld [vmem:[#allocation5 + $0x8] sm:$0xf] }
 0x107   : > { %v1139_v38 = vadd.f32 %v1138_v36, %v1090_v28  ;;  %v1187_v39 = vpop.f32.mrf.mxu3  ;;  %v1091_v56 = vpop.f32.mrf.mxu1 }
 0x108   : > { %v1092_v59 = vadd.f32 %v1091_v56, %v1042_v55 }
 0x109   : > { %v2942_v58 = vadd.f32 %v1187_v39, %v1139_v38 }
 0x10e   : > { %v1140_v4 = vpop.f32.mrf.mxu2  ;;  %v1045_v16 = vpop.f32.mrf.mxu0 }
 0x10f   : > { %v1141_v5 = vadd.f32 %v1140_v4, %v1092_v59  ;;  %v1189_v7 = vpop.f32.mrf.mxu3  ;;  %v1094_v17 = vpop.f32.mrf.mxu1  ;;  %v2026_v4 = vor.u32 %v2359_v3, %v2025_v1  ;;  %v2332_v3 = vld [vmem:[#allocation5 + $0x10] sm:$0xf0] }
 0x110   : > { %v1095_v28 = vadd.f32 %v1094_v17, %v1045_v16 }
 0x111   : > { %v2944_v18 = vadd.f32 %v1189_v7, %v1141_v5  ;;  %1240 = vmatmul.bf16.gmra.mxu0 %v2842_v40  ;;  %1463 = vmatpush.bf16.msra.mxu1 %v2026_v4  ;;  %v2013_v4 = vld [vmem:[#allocation5 + $0xc8] sm:$0xf] }
 0x112   : > { %1289 = vmatmul.bf16.gmra.mxu1 %v2844_v41 }
 0x113   : > { %1338 = vmatmul.bf16.gmra.mxu2 %v2846_v42 }
 0x114   : > { %1387 = vmatmul.bf16.gmra.mxu3 %v2848_v43 }
 0x116   : > { %v1143_v36 = vpop.f32.mrf.mxu2  ;;  %v1047_v55 = vpop.f32.mrf.mxu0 }
 0x117   : > { %v1144_v38 = vadd.f32 %v1143_v36, %v1095_v28  ;;  %v1192_v39 = vpop.f32.mrf.mxu3  ;;  %v1096_v56 = vpop.f32.mrf.mxu1  ;;  %v2110_v36 = vor.u32 %v2380_v33, %v2109_v32 }
 0x118   : > { %v1097_v61 = vadd.f32 %v1096_v56, %v1047_v55 }
 0x119   : > { %v2950_v59 = vadd.f32 %v1192_v39, %v1144_v38  ;;  %v2206_v39 = vor.u32 %v2404_v37, %v2205_v34  ;;  %1513 = vmatpush.bf16.msra.mxu2 %v2110_v36 }
 0x11b   : > { %1562 = vmatpush.bf16.msra.mxu3 %v2206_v39 }
 0x11e   : > { %v1145_v5 = vpop.f32.mrf.mxu2  ;;  %v1050_v17 = vpop.f32.mrf.mxu0 }
 0x11f   : > { %v1146_v7 = vadd.f32 %v1145_v5, %v1097_v61  ;;  %v1194_v16 = vpop.f32.mrf.mxu3  ;;  %v1099_v28 = vpop.f32.mrf.mxu1  ;;  %v1918_v5 = vor.u32 %v2332_v3, %v1917_v2 }
 0x120   : > { %v1100_v31 = vadd.f32 %v1099_v28, %v1050_v17 }
 0x121   : > { %v2952_v29 = vadd.f32 %v1194_v16, %v1146_v7  ;;  %1245 = vmatmul.bf16.gmra.mxu0 %v2862_v8  ;;  %v2356_v7 = vld [vmem:[#allocation5 + $0xd0] sm:$0xf0] }
 0x122   : > { %1294 = vmatmul.bf16.gmra.mxu1 %v2864_v9  ;;  %v2014_v16 = vor.u32 %v2356_v7, %v2013_v4  ;;  %1415 = vmatpush.bf16.msra.mxu0 %v1918_v5 }
 0x123   : > { %1343 = vmatmul.bf16.gmra.mxu2 %v2866_v10 }
 0x124   : > { %1392 = vmatmul.bf16.gmra.mxu3 %v2868_v11  ;;  %1464 = vmatpush.bf16.msra.mxu1 %v2014_v16 }
 0x126   : > { %v1148_v38 = vpop.f32.mrf.mxu2  ;;  %v1052_v61 = vpop.f32.mrf.mxu0 }
 0x127   : > { %v1149_v55 = vadd.f32 %v1148_v38, %v1100_v31  ;;  %v1197_v56 = vpop.f32.mrf.mxu3  ;;  %v1101_v62 = vpop.f32.mrf.mxu1 }
 0x128   : > { %v1102_v1 = vadd.f32 %v1101_v62, %v1052_v61 }
 0x129   : > { %v2958_v63 = vadd.f32 %v1197_v56, %v1149_v55 }
 0x12e   : > { %v1150_v17 = vpop.f32.mrf.mxu2  ;;  %v1055_v31 = vpop.f32.mrf.mxu0 }
 0x12f   : > { %v1151_v28 = vadd.f32 %v1150_v17, %v1102_v1  ;;  %v1199_v32 = vpop.f32.mrf.mxu3  ;;  %v1104_v33 = vpop.f32.mrf.mxu1 }
 0x130   : > { %v1105_v36 = vadd.f32 %v1104_v33, %v1055_v31 }
 0x131   : > { %v2960_v34 = vadd.f32 %v1199_v32, %v1151_v28  ;;  %1250 = vmatmul.bf16.gmra.mxu0 %v2882_v44 }
 0x132   : > { %1299 = vmatmul.bf16.gmra.mxu1 %v2884_v45 }
 0x133   : > { %1348 = vmatmul.bf16.gmra.mxu2 %v2886_v46 }
 0x134   : > { %1397 = vmatmul.bf16.gmra.mxu3 %v2888_v47 }
 0x136   : > { %v1153_v37 = vpop.f32.mrf.mxu2  ;;  %v1057_v55 = vpop.f32.mrf.mxu0 }
 0x137   : > { %v1154_v38 = vadd.f32 %v1153_v37, %v1105_v36  ;;  %v1202_v39 = vpop.f32.mrf.mxu3  ;;  %v1106_v56 = vpop.f32.mrf.mxu1 }
 0x138   : > { %v1107_v62 = vadd.f32 %v1106_v56, %v1057_v55 }
 0x139   : > { %v2966_v61 = vadd.f32 %v1202_v39, %v1154_v38 }
 0x13e   : > { %v1155_v1 = vpop.f32.mrf.mxu2  ;;  %v1060_v4 = vpop.f32.mrf.mxu0 }
 0x13f   : > { %v1156_v2 = vadd.f32 %v1155_v1, %v1107_v62  ;;  %v1204_v3 = vpop.f32.mrf.mxu3  ;;  %v1109_v5 = vpop.f32.mrf.mxu1 }
 0x140   : > { %v1110_v16 = vadd.f32 %v1109_v5, %v1060_v4 }
 0x141   : > { %v2968_v7 = vadd.f32 %v1204_v3, %v1156_v2  ;;  %1255 = vmatmul.bf16.gmra.mxu0 %v2902_v20 }
 0x142   : > { %1304 = vmatmul.bf16.gmra.mxu1 %v2904_v21 }
 0x143   : > { %1353 = vmatmul.bf16.gmra.mxu2 %v2906_v22 }
 0x144   : > { %1402 = vmatmul.bf16.gmra.mxu3 %v2908_v23 }
 0x146   : > { %v1158_v17 = vpop.f32.mrf.mxu2  ;;  %v1062_v31 = vpop.f32.mrf.mxu0 }
 0x147   : > { %v1159_v28 = vadd.f32 %v1158_v17, %v1110_v16  ;;  %v1207_v32 = vpop.f32.mrf.mxu3  ;;  %v1111_v33 = vpop.f32.mrf.mxu1 }
 0x148   : > { %v1112_v37 = vadd.f32 %v1111_v33, %v1062_v31 }
 0x149   : > { %v2974_v36 = vadd.f32 %v1207_v32, %v1159_v28 }
 0x14e   : > { %v1160_v38 = vpop.f32.mrf.mxu2  ;;  %v1221_v56 = vpop.f32.mrf.mxu0 }
 0x14f   : > { %v1161_v39 = vadd.f32 %v1160_v38, %v1112_v37  ;;  %v1209_v55 = vpop.f32.mrf.mxu3  ;;  %v1270_v62 = vpop.f32.mrf.mxu1 }
 0x150   : > { %v1271_v2 = vadd.f32 %v1270_v62, %v1221_v56 }
 0x151   : > { %v2976_v1 = vadd.f32 %v1209_v55, %v1161_v39  ;;  %1416 = vmatmul.bf16.vlgmr.msra.gmra.mxu0 %v2762_v48 }
 0x152   : > { %1465 = vmatmul.bf16.vlgmr.msra.gmra.mxu1 %v2764_v53 }
 0x153   : > { %1514 = vmatmul.bf16.vlgmr.msra.gmra.mxu2 %v2766_v54 }
 0x154   : > { %1563 = vmatmul.bf16.vlgmr.msra.gmra.mxu3 %v2768_v57 }
 0x156   : > { %v1319_v3 = vpop.f32.mrf.mxu2  ;;  %v1223_v16 = vpop.f32.mrf.mxu0 }
 0x157   : > { %v1320_v4 = vadd.f32 %v1319_v3, %v1271_v2  ;;  %v1368_v5 = vpop.f32.mrf.mxu3  ;;  %v1272_v17 = vpop.f32.mrf.mxu1 }
 0x158   : > { %v1273_v48 = vadd.f32 %v1272_v17, %v1223_v16 }
 0x159   : > { %v1369_v28 = vadd.f32 %v1368_v5, %v1320_v4 }
 0x15b   : > { %v1604_v32 = vpack.c.bf16 %v1369_v28, %v2918_v6 }
 0x15d   : > { %1636 = vst [vmem:[%s2984_s20] sm:$0xff] %v1604_v32 }
 0x15e   : > { %v1321_v53 = vpop.f32.mrf.mxu2  ;;  %v1226_v33 = vpop.f32.mrf.mxu0 }
 0x15f   : > { %v1322_v31 = vadd.f32 %v1321_v53, %v1273_v48  ;;  %v1370_v54 = vpop.f32.mrf.mxu3  ;;  %v1275_v57 = vpop.f32.mrf.mxu1 }
 0x160   : > { %v1276_v39 = vadd.f32 %v1275_v57, %v1226_v33 }
 0x161   : > { %v1371_v37 = vadd.f32 %v1370_v54, %v1322_v31  ;;  %1421 = vmatmul.bf16.gmra.mxu0 %v2782_v24 }
 0x162   : > { %1470 = vmatmul.bf16.gmra.mxu1 %v2784_v25 }
 0x163   : > { %v1606_v38 = vpack.c.bf16 %v1371_v37, %v2920_v35  ;;  %1519 = vmatmul.bf16.gmra.mxu2 %v2786_v26 }
 0x164   : > { %1568 = vmatmul.bf16.gmra.mxu3 %v2788_v27 }
 0x165   : > { %1638 = vst [vmem:[%s2984_s20 + $0xc] sm:$0xff] %v1606_v38 }
 0x166   : > { %v1324_v6 = vpop.f32.mrf.mxu2  ;;  %v1228_v62 = vpop.f32.mrf.mxu0 }
 0x167   : > { %v1325_v55 = vadd.f32 %v1324_v6, %v1276_v39  ;;  %v1373_v56 = vpop.f32.mrf.mxu3  ;;  %v1277_v2 = vpop.f32.mrf.mxu1 }
 0x168   : > { %v1278_v24 = vadd.f32 %v1277_v2, %v1228_v62 }
 0x169   : > { %v1374_v3 = vadd.f32 %v1373_v56, %v1325_v55 }
 0x16b   : > { %v1608_v4 = vpack.c.bf16 %v1374_v3, %v2926_v0 }
 0x16d   : > { %1640 = vst [vmem:[%s2984_s20 + $0x18] sm:$0xff] %v1608_v4 }
 0x16e   : > { %v1326_v35 = vpop.f32.mrf.mxu2  ;;  %v1231_v25 = vpop.f32.mrf.mxu0 }
 0x16f   : > { %v1327_v5 = vadd.f32 %v1326_v35, %v1278_v24  ;;  %v1375_v16 = vpop.f32.mrf.mxu3  ;;  %v1280_v17 = vpop.f32.mrf.mxu1 }
 0x170   : > { %v1281_v28 = vadd.f32 %v1280_v17, %v1231_v25 }
 0x171   : > { %v1376_v26 = vadd.f32 %v1375_v16, %v1327_v5  ;;  %1426 = vmatmul.bf16.gmra.mxu0 %v2802_v49 }
 0x172   : > { %1475 = vmatmul.bf16.gmra.mxu1 %v2804_v50 }
 0x173   : > { %v1610_v27 = vpack.c.bf16 %v1376_v26, %v2928_v30  ;;  %1524 = vmatmul.bf16.gmra.mxu2 %v2806_v51 }
 0x174   : > { %1573 = vmatmul.bf16.gmra.mxu3 %v2808_v52 }
 0x175   : > { %1642 = vst [vmem:[%s2984_s20 + $0x24] sm:$0xff] %v1610_v27 }
 0x176   : > { %v1329_v0 = vpop.f32.mrf.mxu2  ;;  %v1233_v53 = vpop.f32.mrf.mxu0 }
 0x177   : > { %v1330_v32 = vadd.f32 %v1329_v0, %v1281_v28  ;;  %v1378_v48 = vpop.f32.mrf.mxu3  ;;  %v1282_v31 = vpop.f32.mrf.mxu1 }
 0x178   : > { %v1283_v49 = vadd.f32 %v1282_v31, %v1233_v53 }
 0x179   : > { %v1379_v54 = vadd.f32 %v1378_v48, %v1330_v32 }
 0x17b   : > { %v1612_v33 = vpack.c.bf16 %v1379_v54, %v2934_v60 }
 0x17d   : > { %1644 = vst [vmem:[%s2984_s20 + $0x30] sm:$0xff] %v1612_v33 }
 0x17e   : > { %v1331_v30 = vpop.f32.mrf.mxu2  ;;  %v1236_v50 = vpop.f32.mrf.mxu0 }
 0x17f   : > { %v1332_v57 = vadd.f32 %v1331_v30, %v1283_v49  ;;  %v1380_v37 = vpop.f32.mrf.mxu3  ;;  %v1285_v38 = vpop.f32.mrf.mxu1 }
 0x180   : > { %v1286_v39 = vadd.f32 %v1285_v38, %v1236_v50 }
 0x181   : > { %v1381_v51 = vadd.f32 %v1380_v37, %v1332_v57  ;;  %1431 = vmatmul.bf16.gmra.mxu0 %v2822_v12 }
 0x182   : > { %1480 = vmatmul.bf16.gmra.mxu1 %v2824_v13 }
 0x183   : > { %v1614_v52 = vpack.c.bf16 %v1381_v51, %v2936_v19  ;;  %1529 = vmatmul.bf16.gmra.mxu2 %v2826_v14 }
 0x184   : > { %1578 = vmatmul.bf16.gmra.mxu3 %v2828_v15 }
 0x185   : > { %1646 = vst [vmem:[%s2984_s20 + $0x3c] sm:$0xff] %v1614_v52 }
 0x186   : > { %v1334_v60 = vpop.f32.mrf.mxu2  ;;  %v1238_v56 = vpop.f32.mrf.mxu0 }
 0x187   : > { %v1335_v6 = vadd.f32 %v1334_v60, %v1286_v39  ;;  %v1383_v55 = vpop.f32.mrf.mxu3  ;;  %v1287_v62 = vpop.f32.mrf.mxu1 }
 0x188   : > { %v1288_v12 = vadd.f32 %v1287_v62, %v1238_v56 }
 0x189   : > { %v1384_v2 = vadd.f32 %v1383_v55, %v1335_v6 }
 0x18b   : > { %v1616_v3 = vpack.c.bf16 %v1384_v2, %v2942_v58 }
 0x18d   : > { %1648 = vst [vmem:[%s2984_s20 + $0x48] sm:$0xff] %v1616_v3 }
 0x18e   : > { %v1336_v19 = vpop.f32.mrf.mxu2  ;;  %v1241_v13 = vpop.f32.mrf.mxu0 }
 0x18f   : > { %v1337_v4 = vadd.f32 %v1336_v19, %v1288_v12  ;;  %v1385_v24 = vpop.f32.mrf.mxu3  ;;  %v1290_v35 = vpop.f32.mrf.mxu1 }
 0x190   : > { %v1291_v5 = vadd.f32 %v1290_v35, %v1241_v13 }
 0x191   : > { %v1386_v14 = vadd.f32 %v1385_v24, %v1337_v4  ;;  %1436 = vmatmul.bf16.gmra.mxu0 %v2842_v40 }
 0x192   : > { %1485 = vmatmul.bf16.gmra.mxu1 %v2844_v41 }
 0x193   : > { %v1618_v15 = vpack.c.bf16 %v1386_v14, %v2944_v18  ;;  %1534 = vmatmul.bf16.gmra.mxu2 %v2846_v42 }
 0x194   : > { %1583 = vmatmul.bf16.gmra.mxu3 %v2848_v43 }
 0x195   : > { %1650 = vst [vmem:[%s2984_s20 + $0x54] sm:$0xff] %v1618_v15 }
 0x196   : > { %v1339_v58 = vpop.f32.mrf.mxu2  ;;  %v1243_v17 = vpop.f32.mrf.mxu0 }
 0x197   : > { %v1340_v16 = vadd.f32 %v1339_v58, %v1291_v5  ;;  %v1388_v25 = vpop.f32.mrf.mxu3  ;;  %v1292_v26 = vpop.f32.mrf.mxu1 }
 0x198   : > { %v1293_v40 = vadd.f32 %v1292_v26, %v1243_v17 }
 0x199   : > { %v1389_v27 = vadd.f32 %v1388_v25, %v1340_v16 }
 0x19b   : > { %v1620_v28 = vpack.c.bf16 %v1389_v27, %v2950_v59 }
 0x19d   : > { %1652 = vst [vmem:[%s2984_s20 + $0x60] sm:$0xff] %v1620_v28 }
 0x19e   : > { %v1341_v18 = vpop.f32.mrf.mxu2  ;;  %v1246_v41 = vpop.f32.mrf.mxu0 }
 0x19f   : > { %v1342_v0 = vadd.f32 %v1341_v18, %v1293_v40  ;;  %v1390_v32 = vpop.f32.mrf.mxu3  ;;  %v1295_v48 = vpop.f32.mrf.mxu1 }
 0x1a0   : > { %v1296_v53 = vadd.f32 %v1295_v48, %v1246_v41 }
 0x1a1   : > { %v1391_v42 = vadd.f32 %v1390_v32, %v1342_v0  ;;  %1441 = vmatmul.bf16.gmra.mxu0 %v2862_v8 }
 0x1a2   : > { %1490 = vmatmul.bf16.gmra.mxu1 %v2864_v9 }
 0x1a3   : > { %v1622_v43 = vpack.c.bf16 %v1391_v42, %v2952_v29  ;;  %1539 = vmatmul.bf16.gmra.mxu2 %v2866_v10 }
 0x1a4   : > { %1588 = vmatmul.bf16.gmra.mxu3 %v2868_v11 }
 0x1a5   : > { %1654 = vst [vmem:[%s2984_s20 + $0x6c] sm:$0xff] %v1622_v43 }
 0x1a6   : > { %v1344_v59 = vpop.f32.mrf.mxu2  ;;  %v1248_v33 = vpop.f32.mrf.mxu0 }
 0x1a7   : > { %v1345_v31 = vadd.f32 %v1344_v59, %v1296_v53  ;;  %v1393_v54 = vpop.f32.mrf.mxu3  ;;  %v1297_v49 = vpop.f32.mrf.mxu1 }
 0x1a8   : > { %v1298_v8 = vadd.f32 %v1297_v49, %v1248_v33 }
 0x1a9   : > { %v1394_v30 = vadd.f32 %v1393_v54, %v1345_v31 }
 0x1ab   : > { %v1624_v57 = vpack.c.bf16 %v1394_v30, %v2958_v63 }
 0x1ad   : > { %1656 = vst [vmem:[%s2984_s20 + $0x78] sm:$0xff] %v1624_v57 }
 0x1ae   : > { %v1346_v29 = vpop.f32.mrf.mxu2  ;;  %v1251_v9 = vpop.f32.mrf.mxu0 }
 0x1af   : > { %v1347_v37 = vadd.f32 %v1346_v29, %v1298_v8  ;;  %v1395_v50 = vpop.f32.mrf.mxu3  ;;  %v1300_v38 = vpop.f32.mrf.mxu1 }
 0x1b0   : > { %v1301_v51 = vadd.f32 %v1300_v38, %v1251_v9 }
 0x1b1   : > { %v1396_v10 = vadd.f32 %v1395_v50, %v1347_v37  ;;  %1446 = vmatmul.bf16.gmra.mxu0 %v2882_v44 }
 0x1b2   : > { %1495 = vmatmul.bf16.gmra.mxu1 %v2884_v45 }
 0x1b3   : > { %v1626_v11 = vpack.c.bf16 %v1396_v10, %v2960_v34  ;;  %1544 = vmatmul.bf16.gmra.mxu2 %v2886_v46 }
 0x1b4   : > { %1593 = vmatmul.bf16.gmra.mxu3 %v2888_v47 }
 0x1b5   : > { %1658 = vst [vmem:[%s2984_s20 + $0x84] sm:$0xff] %v1626_v11 }
 0x1b6   : > { %v1349_v63 = vpop.f32.mrf.mxu2  ;;  %v1253_v60 = vpop.f32.mrf.mxu0 }
 0x1b7   : > { %v1350_v52 = vadd.f32 %v1349_v63, %v1301_v51  ;;  %v1398_v39 = vpop.f32.mrf.mxu3  ;;  %v1302_v6 = vpop.f32.mrf.mxu1 }
 0x1b8   : > { %v1303_v44 = vadd.f32 %v1302_v6, %v1253_v60 }
 0x1b9   : > { %v1399_v55 = vadd.f32 %v1398_v39, %v1350_v52 }
 0x1bb   : > { %v1628_v56 = vpack.c.bf16 %v1399_v55, %v2966_v61 }
 0x1bd   : > { %1660 = vst [vmem:[%s2984_s20 + $0x90] sm:$0xff] %v1628_v56 }
 0x1be   : > { %v1351_v34 = vpop.f32.mrf.mxu2  ;;  %v1256_v45 = vpop.f32.mrf.mxu0 }
 0x1bf   : > { %v1352_v62 = vadd.f32 %v1351_v34, %v1303_v44  ;;  %v1400_v2 = vpop.f32.mrf.mxu3  ;;  %v1305_v3 = vpop.f32.mrf.mxu1 }
 0x1c0   : > { %v1306_v12 = vadd.f32 %v1305_v3, %v1256_v45 }
 0x1c1   : > { %v1401_v46 = vadd.f32 %v1400_v2, %v1352_v62  ;;  %1451 = vmatmul.bf16.gmra.mxu0 %v2902_v20 }
 0x1c2   : > { %1500 = vmatmul.bf16.gmra.mxu1 %v2904_v21 }
 0x1c3   : > { %v1630_v47 = vpack.c.bf16 %v1401_v46, %v2968_v7  ;;  %1549 = vmatmul.bf16.gmra.mxu2 %v2906_v22 }
 0x1c4   : > { %1598 = vmatmul.bf16.gmra.mxu3 %v2908_v23 }
 0x1c5   : > { %1662 = vst [vmem:[%s2984_s20 + $0x9c] sm:$0xff] %v1630_v47 }
 0x1c6   : > { %v1354_v61 = vpop.f32.mrf.mxu2  ;;  %v1258_v24 = vpop.f32.mrf.mxu0 }
 0x1c7   : > { %v1355_v19 = vadd.f32 %v1354_v61, %v1306_v12  ;;  %v1403_v4 = vpop.f32.mrf.mxu3  ;;  %v1307_v13 = vpop.f32.mrf.mxu1 }
 0x1c8   : > { %v1308_v20 = vadd.f32 %v1307_v13, %v1258_v24 }
 0x1c9   : > { %v1404_v35 = vadd.f32 %v1403_v4, %v1355_v19 }
 0x1cb   : > { %v1632_v14 = vpack.c.bf16 %v1404_v35, %v2974_v36 }
 0x1cd   : > { %1664 = vst [vmem:[%s2984_s20 + $0xa8] sm:$0xff] %v1632_v14 }
 0x1ce   : > { %v1356_v7 = vpop.f32.mrf.mxu2  ;;  %v1417_v5 = vpop.f32.mrf.mxu0 }
 0x1cf   : > { %v1357_v15 = vadd.f32 %v1356_v7, %v1308_v20  ;;  %v1405_v21 = vpop.f32.mrf.mxu3  ;;  %v1466_v22 = vpop.f32.mrf.mxu1 }
 0x1d0   : > { %v1467_v16 = vadd.f32 %v1466_v22, %v1417_v5 }
 0x1d1   : > { %v1406_v58 = vadd.f32 %v1405_v21, %v1357_v15 }
 0x1d3   : > { %v1634_v23 = vpack.c.bf16 %v1406_v58, %v2976_v1 }
 0x1d5   : > { %1666 = vst [vmem:[%s2984_s20 + $0xb4] sm:$0xff] %v1634_v23 }
 0x1d6   : > { %v1515_v25 = vpop.f32.mrf.mxu2  ;;  %v1419_v27 = vpop.f32.mrf.mxu0 }
 0x1d7   : > { %v1516_v17 = vadd.f32 %v1515_v25, %v1467_v16  ;;  %v1564_v26 = vpop.f32.mrf.mxu3  ;;  %v1468_v28 = vpop.f32.mrf.mxu1 }
 0x1d8   : > { %v1469_v18 = vadd.f32 %v1468_v28, %v1419_v27 }
 0x1d9   : > { %v1565_v36 = vadd.f32 %v1564_v26, %v1516_v17 }
 0x1db   : > { %v1605_v40 = vpack.c.bf16 %v1565_v36, %v1565_v36 }
 0x1dd   : > { %1637 = vst [vmem:[%s2984_s20 + $0x8] sm:$0xf] %v1605_v40 }
 0x1de   : > { %v1517_v0 = vpop.f32.mrf.mxu2  ;;  %v1422_v48 = vpop.f32.mrf.mxu0 }
 0x1df   : > { %v1518_v32 = vadd.f32 %v1517_v0, %v1469_v18  ;;  %v1566_v41 = vpop.f32.mrf.mxu3  ;;  %v1471_v42 = vpop.f32.mrf.mxu1 }
 0x1e0   : > { %v1472_v53 = vadd.f32 %v1471_v42, %v1422_v48 }
 0x1e1   : > { %v1567_v43 = vadd.f32 %v1566_v41, %v1518_v32 }
 0x1e3   : > { %v1607_v1 = vpack.c.bf16 %v1567_v43, %v1567_v43 }
 0x1e5   : > { %1639 = vst [vmem:[%s2984_s20 + $0x14] sm:$0xf] %v1607_v1 }
 0x1e6   : > { %v1520_v59 = vpop.f32.mrf.mxu2  ;;  %v1424_v33 = vpop.f32.mrf.mxu0 }
 0x1e7   : > { %v1521_v31 = vadd.f32 %v1520_v59, %v1472_v53  ;;  %v1569_v54 = vpop.f32.mrf.mxu3  ;;  %v1473_v49 = vpop.f32.mrf.mxu1 }
 0x1e8   : > { %v1474_v8 = vadd.f32 %v1473_v49, %v1424_v33 }
 0x1e9   : > { %v1570_v30 = vadd.f32 %v1569_v54, %v1521_v31 }
 0x1eb   : > { %v1609_v57 = vpack.c.bf16 %v1570_v30, %v1570_v30 }
 0x1ed   : > { %1641 = vst [vmem:[%s2984_s20 + $0x20] sm:$0xf] %v1609_v57 }
 0x1ee   : > { %v1522_v29 = vpop.f32.mrf.mxu2  ;;  %v1427_v9 = vpop.f32.mrf.mxu0 }
 0x1ef   : > { %v1523_v37 = vadd.f32 %v1522_v29, %v1474_v8  ;;  %v1571_v50 = vpop.f32.mrf.mxu3  ;;  %v1476_v38 = vpop.f32.mrf.mxu1 }
 0x1f0   : > { %v1477_v51 = vadd.f32 %v1476_v38, %v1427_v9 }
 0x1f1   : > { %v1572_v10 = vadd.f32 %v1571_v50, %v1523_v37 }
 0x1f3   : > { %v1611_v11 = vpack.c.bf16 %v1572_v10, %v1572_v10 }
 0x1f5   : > { %1643 = vst [vmem:[%s2984_s20 + $0x2c] sm:$0xf] %v1611_v11 }
 0x1f6   : > { %v1525_v63 = vpop.f32.mrf.mxu2  ;;  %v1429_v60 = vpop.f32.mrf.mxu0 }
 0x1f7   : > { %v1526_v52 = vadd.f32 %v1525_v63, %v1477_v51  ;;  %v1574_v39 = vpop.f32.mrf.mxu3  ;;  %v1478_v6 = vpop.f32.mrf.mxu1 }
 0x1f8   : > { %v1479_v44 = vadd.f32 %v1478_v6, %v1429_v60 }
 0x1f9   : > { %v1575_v55 = vadd.f32 %v1574_v39, %v1526_v52 }
 0x1fb   : > { %v1613_v56 = vpack.c.bf16 %v1575_v55, %v1575_v55 }
 0x1fd   : > { %1645 = vst [vmem:[%s2984_s20 + $0x38] sm:$0xf] %v1613_v56 }
 0x1fe   : > { %v1527_v34 = vpop.f32.mrf.mxu2  ;;  %v1432_v45 = vpop.f32.mrf.mxu0 }
 0x1ff   : > { %v1528_v62 = vadd.f32 %v1527_v34, %v1479_v44  ;;  %v1576_v2 = vpop.f32.mrf.mxu3  ;;  %v1481_v3 = vpop.f32.mrf.mxu1 }
 0x200   : > { %v1482_v12 = vadd.f32 %v1481_v3, %v1432_v45 }
 0x201   : > { %v1577_v46 = vadd.f32 %v1576_v2, %v1528_v62 }
 0x203   : > { %v1615_v47 = vpack.c.bf16 %v1577_v46, %v1577_v46 }
 0x205   : > { %1647 = vst [vmem:[%s2984_s20 + $0x44] sm:$0xf] %v1615_v47 }
 0x206   : > { %v1530_v61 = vpop.f32.mrf.mxu2  ;;  %v1434_v24 = vpop.f32.mrf.mxu0 }
 0x207   : > { %v1531_v19 = vadd.f32 %v1530_v61, %v1482_v12  ;;  %v1579_v4 = vpop.f32.mrf.mxu3  ;;  %v1483_v13 = vpop.f32.mrf.mxu1 }
 0x208   : > { %v1484_v20 = vadd.f32 %v1483_v13, %v1434_v24 }
 0x209   : > { %v1580_v35 = vadd.f32 %v1579_v4, %v1531_v19 }
 0x20b   : > { %v1617_v14 = vpack.c.bf16 %v1580_v35, %v1580_v35 }
 0x20d   : > { %1649 = vst [vmem:[%s2984_s20 + $0x50] sm:$0xf] %v1617_v14 }
 0x20e   : > { %v1532_v7 = vpop.f32.mrf.mxu2  ;;  %v1437_v5 = vpop.f32.mrf.mxu0 }
 0x20f   : > { %v1533_v15 = vadd.f32 %v1532_v7, %v1484_v20  ;;  %v1581_v21 = vpop.f32.mrf.mxu3  ;;  %v1486_v22 = vpop.f32.mrf.mxu1 }
 0x210   : > { %v1487_v16 = vadd.f32 %v1486_v22, %v1437_v5 }
 0x211   : > { %v1582_v58 = vadd.f32 %v1581_v21, %v1533_v15 }
 0x213   : > { %v1619_v23 = vpack.c.bf16 %v1582_v58, %v1582_v58 }
 0x215   : > { %1651 = vst [vmem:[%s2984_s20 + $0x5c] sm:$0xf] %v1619_v23 }
 0x216   : > { %v1535_v25 = vpop.f32.mrf.mxu2  ;;  %v1439_v27 = vpop.f32.mrf.mxu0 }
 0x217   : > { %v1536_v17 = vadd.f32 %v1535_v25, %v1487_v16  ;;  %v1584_v26 = vpop.f32.mrf.mxu3  ;;  %v1488_v28 = vpop.f32.mrf.mxu1 }
 0x218   : > { %v1489_v18 = vadd.f32 %v1488_v28, %v1439_v27 }
 0x219   : > { %v1585_v36 = vadd.f32 %v1584_v26, %v1536_v17 }
 0x21b   : > { %v1621_v40 = vpack.c.bf16 %v1585_v36, %v1585_v36 }
 0x21d   : > { %1653 = vst [vmem:[%s2984_s20 + $0x68] sm:$0xf] %v1621_v40 }
 0x21e   : > { %v1537_v0 = vpop.f32.mrf.mxu2  ;;  %v1442_v48 = vpop.f32.mrf.mxu0 }
 0x21f   : > { %v1538_v32 = vadd.f32 %v1537_v0, %v1489_v18  ;;  %v1586_v41 = vpop.f32.mrf.mxu3  ;;  %v1491_v42 = vpop.f32.mrf.mxu1 }
 0x220   : > { %v1492_v53 = vadd.f32 %v1491_v42, %v1442_v48 }
 0x221   : > { %v1587_v43 = vadd.f32 %v1586_v41, %v1538_v32 }
 0x223   : > { %v1623_v1 = vpack.c.bf16 %v1587_v43, %v1587_v43 }
 0x225   : > { %1655 = vst [vmem:[%s2984_s20 + $0x74] sm:$0xf] %v1623_v1 }
 0x226   : > { %v1540_v59 = vpop.f32.mrf.mxu2  ;;  %v1444_v33 = vpop.f32.mrf.mxu0 }
 0x227   : > { %v1541_v31 = vadd.f32 %v1540_v59, %v1492_v53  ;;  %v1589_v54 = vpop.f32.mrf.mxu3  ;;  %v1493_v49 = vpop.f32.mrf.mxu1 }
 0x228   : > { %v1494_v8 = vadd.f32 %v1493_v49, %v1444_v33 }
 0x229   : > { %v1590_v30 = vadd.f32 %v1589_v54, %v1541_v31 }
 0x22b   : > { %v1625_v57 = vpack.c.bf16 %v1590_v30, %v1590_v30 }
 0x22d   : > { %1657 = vst [vmem:[%s2984_s20 + $0x80] sm:$0xf] %v1625_v57 }
 0x22e   : > { %v1542_v29 = vpop.f32.mrf.mxu2  ;;  %v1447_v9 = vpop.f32.mrf.mxu0 }
 0x22f   : > { %v1543_v37 = vadd.f32 %v1542_v29, %v1494_v8  ;;  %v1591_v50 = vpop.f32.mrf.mxu3  ;;  %v1496_v38 = vpop.f32.mrf.mxu1 }
 0x230   : > { %v1497_v51 = vadd.f32 %v1496_v38, %v1447_v9 }
 0x231   : > { %v1592_v10 = vadd.f32 %v1591_v50, %v1543_v37 }
 0x233   : > { %v1627_v11 = vpack.c.bf16 %v1592_v10, %v1592_v10 }
 0x235   : > { %1659 = vst [vmem:[%s2984_s20 + $0x8c] sm:$0xf] %v1627_v11 }
 0x236   : > { %v1545_v63 = vpop.f32.mrf.mxu2  ;;  %v1449_v60 = vpop.f32.mrf.mxu0 }
 0x237   : > { %v1546_v52 = vadd.f32 %v1545_v63, %v1497_v51  ;;  %v1594_v39 = vpop.f32.mrf.mxu3  ;;  %v1498_v6 = vpop.f32.mrf.mxu1 }
 0x238   : > { %v1499_v44 = vadd.f32 %v1498_v6, %v1449_v60 }
 0x239   : > { %v1595_v55 = vadd.f32 %v1594_v39, %v1546_v52 }
 0x23b   : > { %v1629_v56 = vpack.c.bf16 %v1595_v55, %v1595_v55 }
 0x23d   : > { %1661 = vst [vmem:[%s2984_s20 + $0x98] sm:$0xf] %v1629_v56 }
 0x23e   : > { %v1547_v34 = vpop.f32.mrf.mxu2  ;;  %v1452_v45 = vpop.f32.mrf.mxu0 }
 0x23f   : > { %v1548_v62 = vadd.f32 %v1547_v34, %v1499_v44  ;;  %v1596_v2 = vpop.f32.mrf.mxu3  ;;  %v1501_v3 = vpop.f32.mrf.mxu1 }
 0x240   : > { %v1502_v12 = vadd.f32 %v1501_v3, %v1452_v45 }
 0x241   : > { %v1597_v46 = vadd.f32 %v1596_v2, %v1548_v62 }
 0x243   : > { %v1631_v47 = vpack.c.bf16 %v1597_v46, %v1597_v46 }
 0x245   : > { %1663 = vst [vmem:[%s2984_s20 + $0xa4] sm:$0xf] %v1631_v47 }
 0x246   : > { %v1550_v61 = vpop.f32.mrf.mxu2  ;;  %v1454_v13 = vpop.f32.mrf.mxu0 }
 0x247   : > { %v1551_v19 = vadd.f32 %v1550_v61, %v1502_v12  ;;  %v1599_v4 = vpop.f32.mrf.mxu3  ;;  %v1503_v35 = vpop.f32.mrf.mxu1 }
 0x248   : > { %v1504_v20 = vadd.f32 %v1503_v35, %v1454_v13 }
 0x249   : > { %v1600_v24 = vadd.f32 %v1599_v4, %v1551_v19 }
 0x24b   : > { %v1633_v14 = vpack.c.bf16 %v1600_v24, %v1600_v24 }
 0x24d   : > { %1665 = vst [vmem:[%s2984_s20 + $0xb0] sm:$0xf] %v1633_v14 }
 0x24e   : > { %v1552_v7 = vpop.f32.mrf.mxu2 }
 0x24f   : > { %v1553_v15 = vadd.f32 %v1552_v7, %v1504_v20  ;;  %v1601_v21 = vpop.f32.mrf.mxu3 }
 0x251   : > { %v1602_v5 = vadd.f32 %v1601_v21, %v1553_v15 }
 0x253   : > { %v1635_v22 = vpack.c.bf16 %v1602_v5, %v1602_v5 }
 0x255   : > { %1667 = vst [vmem:[%s2984_s20 + $0xbc] sm:$0xf] %v1635_v22 }
 0x256   : > { %2578 = shalt.err (!%p2575_p10)
}
 0x257   : > { %s2628_s5 = smov 192   ;;  %s2629_s6 = smov 12  }
 0x258   : > { %2434 = dma.vmem_to_hbm [thread:$0]  (%p2712_p7), %s1683_s21, 3072, %s1685_s22, %s1669_s13, %s2628_s5, %s2628_s5, %s2629_s6  }
 0x259 PF: > { %s1699_s7 = sand.u32 1, %s2609_s9   ;;  %p3103_p12 = scmp.ge.s32.totalorder %s2621_s12, 2 }
 0x25a   : > { %s1700_s14 = scalar_lea.sflag [#allocation4], %s1699_s7 }
 0x25b   : > { %p2445_p13 = pnand %p3103_p12, %p2680_p6 }
 0x25d   : > { %p2446_p0 = pneg %p2445_p13 }
 0x25f   : > { %2604 = dma.done.wait (%p2446_p0), %s1700_s14, 3072  }
 0x260   : > { %2606 = vsyncadd (%p2446_p0), %s1700_s14, 4294964224  ;;  %p16_p3 = scmp.ge.s32.totalorder %s2698_s23, 4   ;;  %s3104_s9 = smov %s2613_s10 }
 0x261   : > { %s3105_s10 = smov %s2617_s11  ;;  %s3106_s11 = smov %s2708_s28 }
 0x262   : > { %s3107_s12 = smov %s2698_s23  ;;  %18 = sbr.rel (!%p16_p3) target bundleno = 6 (0x6), region = 77 }
 0x267   :  { %1706 = vsyncpa [#allocation3], 1 }
 0x268   :  { %1708 = vsyncpa [#allocation3 + $0x1], 1 }
 0x269   :  { %1709 = vsyncpa [#allocation6], 1 }
 0x26a   :  { %1710 = vsyncpa [#allocation4], 1 }
 0x26b   :  { %1712 = vsyncpa [#allocation4 + $0x1], 1 }

</bundles_post_ra>
